<compile_context>
chip_gen: v7x
topology: tpu7x:2x2x1
jax: 0.10.0
libtpu: 0.0.40
codegen_flags: <defaults>
</compile_context>

<pallas_src>
import jax
import jax.numpy as jnp
from jax.experimental import pallas as pl
from jax.experimental.pallas import tpu as pltpu

LANE = 128
NEG = -1e30  # additive mask value for invalid conv positions


def textcnn_kernel(x_ref, w_ref, b_ref, mask_ref, out_ref):
    """x:(TB,S,V) f32, w:(KMAX*V,N) bf16, b:(1,N) f32, mask:(S,N) f32 additive, out:(TB,N) f32."""
    TB, S, V = x_ref.shape
    N = out_ref.shape[-1]
    KMAX = w_ref.shape[0] // V
    total = TB * S

    # im2col: tap i of row r is x2d[(r + i) mod total]. Wrapped rows only ever land
    # on positions that are invalid (l > S - k) for every branch using that tap and
    # are killed by the additive mask before the max.
    x2d = x_ref[...].reshape(total, V)                      # f32, (TB*S, V)
    taps = [x2d]
    for i in range(1, KMAX):                                 # static unroll, KMAX = 4
        taps.append(pltpu.roll(x2d, total - i, axis=0))
    x_taps = jnp.concatenate(taps, axis=1).astype(jnp.bfloat16)   # (TB*S, KMAX*V) bf16

    # Single MXU matmul over all taps / branches (channel axis lane-padded to N=128).
    acc = jnp.dot(x_taps, w_ref[...], preferred_element_type=jnp.float32)  # (TB*S, N)

    # Mask invalid positions, reduce over S first, then bias + ReLU once per (TB, N)
    # (relu is monotone: max_l relu(a_l + b) == relu(max_l a_l + b)).
    acc = acc.reshape(TB, S, N) + mask_ref[...][None, :, :]
    m = jnp.max(acc, axis=1)                                 # (TB, N)
    out_ref[...] = jnp.maximum(m + b_ref[...], 0.0)


def _vmem_limit_bytes(tb, S, V, kmax, n_pad):
    io_bytes = 2 * (tb * S * V * 4 + tb * n_pad * 4)               # double-buffered x / out tiles
    resident = 2 * (kmax * V * n_pad * 2 + n_pad * 4 + S * n_pad * 4)  # weights/bias/mask
    temps = 2 * tb * S * (kmax * V * 6 + n_pad * 4)                # im2col (f32+bf16) + acc f32
    budget = 4 * (io_bytes + resident + temps)                     # generous headroom
    try:
        cap = pltpu.get_tpu_info().vmem_capacity_bytes             # 64 MiB on v7x, 128 on v5e/v6e
    except Exception:
        cap = 64 << 20
    return int(min(max(budget, 4 << 20), (3 * cap) // 4))


def textcnn_forward(x, w_flat, b_fused, mask, *, batch_tile=32):
    """x: (B,S,V) f32. Returns (B_pad, NPAD) f32 (caller crops rows/channels)."""
    B, S, V = x.shape
    kv, n_pad = w_flat.shape
    kmax = kv // V
    tb = batch_tile
    B_pad = ((B + tb - 1) // tb) * tb

    x_p = x if B_pad == B else jnp.pad(x, ((0, B_pad - B), (0, 0), (0, 0)))
    grid = (B_pad // tb,)

    cost = pl.CostEstimate(
        flops=2 * B_pad * S * kv * n_pad,
        transcendentals=0,
        bytes_accessed=(x_p.size * 4 + w_flat.size * 2
                        + b_fused.size * 4 + mask.size * 4 + B_pad * n_pad * 4),
    )

    return pl.pallas_call(
        textcnn_kernel,
        out_shape=jax.ShapeDtypeStruct((B_pad, n_pad), jnp.float32),
        grid=grid,
        in_specs=[
            pl.BlockSpec((tb, S, V), lambda b: (b, 0, 0)),       # x: tiled over batch
            pl.BlockSpec(w_flat.shape, lambda b: (0, 0)),        # weights: VMEM-resident
            pl.BlockSpec(b_fused.shape, lambda b: (0, 0)),       # bias: resident
            pl.BlockSpec(mask.shape, lambda b: (0, 0)),          # mask: resident
        ],
        out_specs=pl.BlockSpec((tb, n_pad), lambda b: (b, 0)),   # lane-dense store
        compiler_params=pltpu.CompilerParams(
            dimension_semantics=("parallel",),
            vmem_limit_bytes=_vmem_limit_bytes(tb, S, V, kmax, n_pad)),
        cost_estimate=cost,
    )(x_p, w_flat, b_fused, mask)


def pack_params(params, kernel_size_list, vector_size, out_channels, n_pad=LANE):
    """Fuse per-branch (k,V,C)/(1,C) params into (KMAX*V, NPAD) bf16 + (1, NPAD) f32."""
    kmax = max(kernel_size_list)
    C = out_channels
    assert len(kernel_size_list) * C <= n_pad
    w_fused = jnp.zeros((kmax, vector_size, n_pad), jnp.float32)
    b_fused = jnp.zeros((1, n_pad), jnp.float32)
    col = 0
    for (w, b), k in zip(params, kernel_size_list):
        assert w.shape == (k, vector_size, C) and b.shape == (1, C)
        w_fused = w_fused.at[:k, :, col:col + C].set(w)
        b_fused = b_fused.at[:, col:col + C].set(b)
        col += C
    # Flatten (KMAX, V, N) -> (KMAX*V, N): row i*V+v matches im2col column i*V+v.
    w_flat = w_fused.reshape(kmax * vector_size, n_pad).astype(jnp.bfloat16)
    return w_flat, b_fused


def build_mask(max_seq_len, kernel_size_list, out_channels, n_pad=LANE):
    """(S, NPAD) f32 additive mask: 0 where position l is valid (l <= S-k), NEG elsewhere.
    Padded channel columns (>= len(ks)*C) stay 0 ('valid') so no lane is all-NEG."""
    S, C = max_seq_len, out_channels
    pos = jnp.arange(S)
    mask = jnp.zeros((S, n_pad), jnp.float32)
    col = 0
    for k in kernel_size_list:            # MUST use the same order / C as pack_params
        invalid = (pos > S - k).astype(jnp.float32) * NEG
        mask = mask.at[:, col:col + C].set(invalid[:, None])
        col += C
    return mask


def make_textcnn_forward(params, kernel_size_list, max_seq_len, vector_size,
                         out_channels, *, batch_tile=32):
    """Pack parameters ONCE and return a jitted forward(x) -> (B, len(ks)*C)."""
    w_flat, b_fused = pack_params(params, kernel_size_list, vector_size, out_channels)
    mask = build_mask(max_seq_len, kernel_size_list, out_channels)
    n_out = len(kernel_size_list) * out_channels

    @jax.jit
    def forward(x):
        out_full = textcnn_forward(x, w_flat, b_fused, mask, batch_tile=batch_tile)
        return out_full[:x.shape[0], :n_out]

    return forward


def init_params(key, kernel_size_list, vector_size, out_channels):
    """Deterministic synthetic init matching Conv2d parameter shapes (stored as (k,V,C),(1,C))."""
    params = []
    for ks in kernel_size_list:
        key, kw, kb = jax.random.split(key, 3)
        fan_in = 1 * ks * vector_size
        bound = 1.0 / jnp.sqrt(fan_in)
        w_pt = jax.random.uniform(kw, (out_channels, 1, ks, vector_size),
                                  jnp.float32, -bound, bound)
        b_pt = jax.random.uniform(kb, (out_channels,), jnp.float32, -bound, bound)
        w = jnp.transpose(w_pt[:, 0, :, :], (1, 2, 0))   # (ks, V, C)
        b = b_pt.reshape(1, out_channels)                # (1, C)
        params.append((w, b))
    return params


def reference_forward(x, params, kernel_size_list, match_bf16=False):
    """Pure-JAX reference. match_bf16=True mimics the kernel's bf16 matmul inputs."""
    B, S, V = x.shape
    xx = x.astype(jnp.bfloat16).astype(jnp.float32) if match_bf16 else x
    outs = []
    for (w, b), k in zip(params, kernel_size_list):
        ww = w.astype(jnp.bfloat16).astype(jnp.float32) if match_bf16 else w
        C = w.shape[-1]
        L = S - k + 1
        acc = jnp.zeros((B, L, C), jnp.float32)
        for i in range(k):
            acc = acc + jnp.einsum('blv,vc->blc', xx[:, i:i + L, :], ww[i])
        acc = jnp.maximum(acc + b[0][None, None, :], 0.0)
        outs.append(jnp.max(acc, axis=1))
    return jnp.concatenate(outs, axis=1)


if __name__ == "__main__":
    vector_size = 16
    max_seq_len = 8
    out_channels = 8
    kernel_size_list = [4, 2, 1]
    batch = 64          # with batch_tile=32: M = 32*8 = 256 per step, even grid of 2
    batch_tile = 32

    key = jax.random.PRNGKey(0)
    key, kx = jax.random.split(key)
    x = jax.random.normal(kx, (batch, max_seq_len, vector_size), jnp.float32)
    params = init_params(key, kernel_size_list, vector_size, out_channels)

    forward = make_textcnn_forward(params, kernel_size_list, max_seq_len,
                                   vector_size, out_channels, batch_tile=batch_tile)
    out = jax.block_until_ready(forward(x))

    ref_bf16 = jax.block_until_ready(
        reference_forward(x, params, kernel_size_list, match_bf16=True))
    ref_f32 = jax.block_until_ready(
        reference_forward(x, params, kernel_size_list, match_bf16=False))

    assert out.shape == (batch, len(kernel_size_list) * out_channels)
    assert jnp.allclose(out, ref_bf16, atol=1e-3, rtol=1e-3)   # same-math check
    assert jnp.allclose(out, ref_f32, atol=5e-2, rtol=5e-2)    # f32 semantics check

    print("KERNEL_OK")
</pallas_src>

<mosaic_0001>
module attributes {stable_mosaic.version = 11 : i64} {
  func.func @textcnn_kernel(%arg0: i32, %arg1: memref<32x8x16xf32, #tpu.memory_space<vmem>>, %arg2: memref<64x128xbf16, #tpu.memory_space<vmem>>, %arg3: memref<1x128xf32, #tpu.memory_space<vmem>>, %arg4: memref<8x128xf32, #tpu.memory_space<vmem>>, %arg5: memref<32x128xf32, #tpu.memory_space<vmem>>) attributes {dimension_semantics = [#tpu.dimension_semantics<parallel>], iteration_bounds = array<i64: 2>, scalar_prefetch = 0 : i64, scratch_operands = 0 : i64, tpu.core_type = #tpu.core_type<tc>, window_params = [{transform_indices = @transform_0, window_bounds = array<i64: 32, 8, 16>}, {pipeline_mode = #tpu.pipeline_mode<synchronous>, transform_indices = @transform_1, window_bounds = array<i64: 64, 128>}, {pipeline_mode = #tpu.pipeline_mode<synchronous>, transform_indices = @transform_2, window_bounds = array<i64: 1, 128>}, {pipeline_mode = #tpu.pipeline_mode<synchronous>, transform_indices = @transform_3, window_bounds = array<i64: 8, 128>}, {transform_indices = @transform_4, window_bounds = array<i64: 32, 128>}]} {
    %c0 = arith.constant 0 : index
    %c0_0 = arith.constant 0 : index
    %c0_1 = arith.constant 0 : index
    %0 = vector.load %arg1[%c0, %c0_0, %c0_1] : memref<32x8x16xf32, #tpu.memory_space<vmem>>, vector<32x8x16xf32>
    %1 = vector.shape_cast %0 : vector<32x8x16xf32> to vector<256x16xf32>
    %c255_i32 = arith.constant 255 : i32
    %2 = tpu.dynamic_rotate %1 by %c255_i32 dim 0 : vector<256x16xf32>, i32 -> vector<256x16xf32>
    %c254_i32 = arith.constant 254 : i32
    %3 = tpu.dynamic_rotate %1 by %c254_i32 dim 0 : vector<256x16xf32>, i32 -> vector<256x16xf32>
    %c253_i32 = arith.constant 253 : i32
    %4 = tpu.dynamic_rotate %1 by %c253_i32 dim 0 : vector<256x16xf32>, i32 -> vector<256x16xf32>
    %5 = tpu.concatenate %1, %2, %3, %4 in 1 : vector<256x16xf32>, vector<256x16xf32>, vector<256x16xf32>, vector<256x16xf32> -> vector<256x64xf32>
    %6 = arith.truncf %5 : vector<256x64xf32> to vector<256x64xbf16>
    %c0_2 = arith.constant 0 : index
    %c0_3 = arith.constant 0 : index
    %7 = vector.load %arg2[%c0_2, %c0_3] : memref<64x128xbf16, #tpu.memory_space<vmem>>, vector<64x128xbf16>
    %cst = arith.constant dense<0.000000e+00> : vector<256x128xf32>
    %8 = tpu.matmul %6, %7, %cst {dimension_numbers = #tpu.dot_dimension_numbers<[1], [0], [0], [1], [0, 0, 1, 1], [], []>} : vector<256x64xbf16>, vector<64x128xbf16>, vector<256x128xf32> -> vector<256x128xf32>
    %9 = vector.shape_cast %8 : vector<256x128xf32> to vector<32x8x128xf32>
    %c0_4 = arith.constant 0 : index
    %c0_5 = arith.constant 0 : index
    %10 = vector.load %arg4[%c0_4, %c0_5] : memref<8x128xf32, #tpu.memory_space<vmem>>, vector<8x128xf32>
    %11 = vector.shape_cast %10 : vector<8x128xf32> to vector<1x8x128xf32>
    %12 = vector.broadcast %11 : vector<1x8x128xf32> to vector<32x8x128xf32>
    %13 = arith.addf %9, %12 : vector<32x8x128xf32>
    %cst_6 = arith.constant dense<0xFF800000> : vector<32x128xf32>
    %14 = vector.multi_reduction <maximumf>, %13, %cst_6 [1] : vector<32x8x128xf32> to vector<32x128xf32>
    %c0_7 = arith.constant 0 : index
    %c0_8 = arith.constant 0 : index
    %15 = vector.load %arg3[%c0_7, %c0_8] : memref<1x128xf32, #tpu.memory_space<vmem>>, vector<1x128xf32>
    %16 = vector.broadcast %15 : vector<1x128xf32> to vector<32x128xf32>
    %17 = arith.addf %14, %16 : vector<32x128xf32>
    %cst_9 = arith.constant 0.000000e+00 : f32
    %18 = vector.broadcast %cst_9 : f32 to vector<32x128xf32>
    %19 = arith.maximumf %17, %18 : vector<32x128xf32>
    %c0_10 = arith.constant 0 : index
    %c0_11 = arith.constant 0 : index
    %20 = vector.load %arg5[%c0_10, %c0_11] : memref<32x128xf32, #tpu.memory_space<vmem>>, vector<32x128xf32>
    tpu.vector_store %arg5[%c0_10, %c0_11], %19 {strides = array<i32>} : memref<32x128xf32, #tpu.memory_space<vmem>>, vector<32x128xf32>,
    return
  }
  func.func @transform_0(%arg0: i32) -> (i32, i32, i32) {
    %c0_i32 = arith.constant 0 : i32
    %c0_i32_0 = arith.constant 0 : i32
    %c0_i32_1 = arith.constant 0 : i32
    return %arg0, %c0_i32, %c0_i32_0 : i32, i32, i32
  }
  func.func @transform_1(%arg0: i32) -> (i32, i32) {
    %c0_i32 = arith.constant 0 : i32
    %c0_i32_0 = arith.constant 0 : i32
    %c0_i32_1 = arith.constant 0 : i32
    return %c0_i32, %c0_i32_0 : i32, i32
  }
  func.func @transform_2(%arg0: i32) -> (i32, i32) {
    %c0_i32 = arith.constant 0 : i32
    %c0_i32_0 = arith.constant 0 : i32
    %c0_i32_1 = arith.constant 0 : i32
    return %c0_i32, %c0_i32_0 : i32, i32
  }
  func.func @transform_3(%arg0: i32) -> (i32, i32) {
    %c0_i32 = arith.constant 0 : i32
    %c0_i32_0 = arith.constant 0 : i32
    %c0_i32_1 = arith.constant 0 : i32
    return %c0_i32, %c0_i32_0 : i32, i32
  }
  func.func @transform_4(%arg0: i32) -> (i32, i32) {
    %c0_i32 = arith.constant 0 : i32
    %c0_i32_0 = arith.constant 0 : i32
    return %arg0, %c0_i32 : i32, i32
  }
}

</mosaic_0001>

<bundles_post_ra>
// kernel: forward.1
= control target key start
LH: loop header
LB: loop body
LE: loop exit
PB: predicated region body
PF: predicated region fallthrough
CT: control target
= control target key end

     0   :  { %s2018_s15 = smov 0   ;;  %s2936_s0 = inlined_call_operand.vmem [shape: f32[64,8,16], index: 0, kind: input, shape index: {}]   ;;  %s2937_s1 = inlined_call_operand.vmem [shape: bf16[64,128], index: 1, kind: input, shape index: {}]   ;;  %s2938_s2 = inlined_call_operand.vmem [shape: f32[1,128], index: 2, kind: input, shape index: {}]   ;;  %s2939_s3 = inlined_call_operand.vmem [shape: f32[8,128], index: 3, kind: input, shape index: {}]   ;;  %s2940_s4 = inlined_call_operand.vmem [shape: f32[64,128], index: 4, kind: output, shape index: {}]  }
   0x1 LB: > { %s1627_s16 = sadd.s32 4294967295, %s1988_s15   ;;  %p1631_p0 = scmp.ge.s32.totalorder %s1988_s15, 1  ;;  %s1988_s15 = sphi %s2018_s15, %s14_s15  }
   0x2   : > { %p163_p1 = scmp.lt.s32.totalorder %s1988_s15, 3 }
   0x4   : > { %p164_p2 = pnand %p1631_p0, %p163_p1 }
   0x5   : > { %s1632_s17 = sshll.u32 (!%p164_p2), %s1627_s16, 5  ;;  %v266_v0 = vlaneseq (!%p164_p2)  ;;  %v1978_v2 = vld [vmem:[%s2937_s1] sm:$0xff] (!%p164_p2)   ;;  %s1990_s24 = smov (!%p164_p2), 32   ;;  %v1979_v56 = vld [vmem:[%s2937_s1 + $0x8] sm:$0xff] (!%p164_p2)   ;;  %v1980_v57 = vld [vmem:[%s2937_s1 + $0x10] sm:$0xff] (!%p164_p2)   ;;  %vm815_vm3 = vcmask (!%p164_p2), 130048  }
   0x6   : > { %167 = sbr.rel (%p164_p2) target bundleno = 475 (0x1db), region = 36  ;;  %p190_p3 = scmp.lt.s32.totalorder (!%p164_p2), %s1632_s17, 63  ;;  %1679 = vmatprep.subr.bf16.mxu0 (!%p164_p2), %v1978_v2  ;;  %1719 = vmatprep.subr.bf16.mxu1 (!%p164_p2), %v1978_v2  ;;  %vm848_vm4 = vcmask (!%p164_p2), 261120   ;;  %vm881_vm5 = vcmask (!%p164_p2), 392192   ;;  %vm962_vm6 = vcmask (!%p164_p2), 523264   ;;  %vm1501_vm7 = vcmask (!%p164_p2), 1041409  }
   0x7   : > { %v2028_v1 = vshrl.u32 (!%p164_p2), %v266_v0, 7  ;;  %1680 = vmatpush3.bf16.msra.mxu0 (!%p164_p2), %v1978_v2  ;;  %1723 = vmatpush3.bf16.msra.mxu1 (!%p164_p2), %v1978_v2  ;;  %s1991_s25 = smov (!%p164_p2), 16   ;;  %s1992_s30 = smov (!%p164_p2), 48   ;;  %vm1504_vm8 = vcmask (!%p164_p2), 1042434   ;;  %vm1507_vm9 = vcmask (!%p164_p2), 1043459   ;;  %vm1510_vm10 = vcmask (!%p164_p2), 1044484  }
   0x8   : > { %1681 = vmatprep.subr.bf16.mxu0 (!%p164_p2), %v1979_v56  ;;  %1720 = vmatprep.subr.bf16.mxu1 (!%p164_p2), %v1979_v56  ;;  %s2842_s11 = sshll.u32 (!%p164_p2), %s1627_s16, 2  ;;  %vm1513_vm11 = vcmask (!%p164_p2), 1045509   ;;  %vm1516_vm12 = vcmask (!%p164_p2), 1046534   ;;  %vm1519_vm13 = vcmask (!%p164_p2), 1047559  }
   0x9   : > { %vm333_vm0 = vcmp.lt.s32.totalorder (!%p164_p2), %v2028_v1, 6  ;;  %vm268_vm1 = vcmp.lt.s32.totalorder (!%p164_p2), %v2028_v1, 7  ;;  %vm398_vm2 = vcmp.lt.s32.totalorder (!%p164_p2), %v2028_v1, 5  ;;  %p196_p4 = scmp.lt.s32.totalorder (!%p164_p2), %s2842_s11, 7 }
   0xb   : > { %1682 = vmatpush3.bf16.msra.mxu0 (!%p164_p2), %v1979_v56  ;;  %1724 = vmatpush3.bf16.msra.mxu1 (!%p164_p2), %v1979_v56 }
   0xc   : > { %1683 = vmatprep.subr.bf16.mxu0 (!%p164_p2), %v1980_v57  ;;  %1721 = vmatprep.subr.bf16.mxu1 (!%p164_p2), %v1980_v57 }
   0xd   : > { %s2968_s17 = smov (!%p190_p3, %s1632_s17), 63  ;;  %s2970_s11 = smov (!%p196_p4, %s2842_s11), 7 }
   0xe   : > { %s1633_s20 = sshll.u32 %s2968_s17, 3  ;;  %s1635_s12 = sshll.u32 %s2970_s11, 3 }
   0xf   : > { %s2036_s23 = scalar_lea.vmem %s2936_s0, %s1633_s20  ;;  %1684 = vmatpush3.bf16.msra.mxu0 %v1980_v57  ;;  %1725 = vmatpush3.bf16.msra.mxu1 %v1980_v57  ;;  %s2864_s16 = scalar_lea.vmem %s2940_s4, %s1635_s12 }
  0x10   : > { %v2039_v3 = vld [vmem:[%s2036_s23] sm:$0xff]  ;;  %v2042_v4 = vld [vmem:[%s2036_s23 + $0x8] sm:$0xff]  ;;  %v2045_v5 = vld [vmem:[%s2036_s23 + $0x10] sm:$0xff] }
  0x11   : > { %v301_v6 = vrot.slane %v2039_v3, 2  ;;  %v302_v7 = vrot.slane %v2042_v4, 2  ;;  %v303_v8 = vrot.slane %v2045_v5, 2  ;;  %v234_v9 = vrot.slane %v2039_v3, 1  ;;  %v2055_v10 = vld [vmem:[%s2036_s23 + $0x80] sm:$0xff]  ;;  %v2058_v11 = vld [vmem:[%s2036_s23 + $0x88] sm:$0xff] }
  0x12   : > { %v235_v12 = vrot.slane %v2042_v4, 1  ;;  %v236_v13 = vrot.slane %v2045_v5, 1  ;;  %v2063_v14 = vld [vmem:[%s2036_s23 + $0x90] sm:$0xff]  ;;  %v250_v15 = vrot.slane %v2055_v10, 1  ;;  %v251_v16 = vrot.slane %v2058_v11, 1  ;;  %v2068_v17 = vld [vmem:[%s2036_s23 + $0x18] sm:$0xff] }
  0x13   : > { %v363_v18 = vsel %vm333_vm0, %v302_v7, %v303_v8  ;;  %v364_v19 = vsel %vm333_vm0, %v301_v6, %v302_v7  ;;  %v252_v20 = vrot.slane %v2063_v14, 1  ;;  %v2078_v21 = vld [vmem:[%s2036_s23 + $0x20] sm:$0xff]  ;;  %v237_v22 = vrot.slane %v2068_v17, 1  ;;  %v2109_v39 = vld [vmem:[%s2036_s23 + $0x98] sm:$0xff] }
  0x14   : > { %v1748_v23 = vpack.i.bf16 %v363_v18, %v364_v19  ;;  %v298_v24 = vsel %vm268_vm1, %v235_v12, %v236_v13  ;;  %v299_v25 = vsel %vm268_vm1, %v234_v9, %v235_v12  ;;  %v283_v26 = vsel %vm268_vm1, %v250_v15, %v251_v16  ;;  %v2112_v40 = vld [vmem:[%s2036_s23 + $0xa0] sm:$0xff] }
  0x15   : > { %v1738_v27 = vpack.i.bf16 %v298_v24, %v299_v25  ;;  %v282_v28 = vsel %vm268_vm1, %v251_v16, %v252_v20  ;;  %v238_v29 = vrot.slane %v2078_v21, 1  ;;  %v297_v30 = vsel %vm268_vm1, %v236_v13, %v237_v22  ;;  %v2166_v13 = vld [vmem:[%s2036_s23 + $0x30] sm:$0xff]  ;;  %v2169_v16 = vld [vmem:[%s2036_s23 + $0x38] sm:$0xff]  ;;  %v2172_v18 = vld [vmem:[%s2036_s23 + $0x40] sm:$0xff] }
  0x16   : > { %1749 = vrot.lane.b32.xlu1 %v1748_v23, %s1990_s24  ;;  %v1753_v31 = vpack.i.bf16 %v282_v28, %v283_v26  ;;  %v366_v32 = vrot.slane %v2039_v3, 3  ;;  %v367_v33 = vrot.slane %v2042_v4, 3  ;;  %v368_v34 = vrot.slane %v2045_v5, 3  ;;  %v1981_v24 = vld [vmem:[%s2937_s1 + $0x18] sm:$0xff]  }
  0x17   : > { %1739 = vrot.lane.b32.xlu0 %v1738_v27, %s1991_s25  ;;  %v296_v35 = vsel %vm268_vm1, %v237_v22, %v238_v29  ;;  %v304_v36 = vrot.slane %v2068_v17, 2  ;;  %v305_v37 = vrot.slane %v2078_v21, 2  ;;  %v317_v38 = vrot.slane %v2055_v10, 2  ;;  %v2188_v27 = vld [vmem:[%s2036_s23 + $0x28] sm:$0xff]  ;;  %1685 = vmatprep.subr.bf16.mxu0 %v1981_v24 }
  0x18   : > { %v1743_v41 = vpack.i.bf16 %v296_v35, %v297_v30  ;;  %v428_v42 = vsel %vm398_vm2, %v367_v33, %v368_v34  ;;  %v429_v43 = vsel %vm398_vm2, %v366_v32, %v367_v33  ;;  %v318_v44 = vrot.slane %v2058_v11, 2  ;;  %v2200_v35 = vld [vmem:[%s2036_s23 + $0xa8] sm:$0xff]  ;;  %1722 = vmatprep.subr.bf16.mxu1 %v1981_v24  ;;  %1686 = vmatpush3.bf16.msra.mxu0 %v1981_v24 }
  0x19   : > { %v361_v45 = vsel %vm333_vm0, %v304_v36, %v305_v37  ;;  %v362_v46 = vsel %vm333_vm0, %v303_v8, %v304_v36  ;;  %v319_v47 = vrot.slane %v2063_v14, 2  ;;  %v1763_v48 = vpack.i.bf16 %v428_v42, %v429_v43  ;;  %v2203_v36 = vld [vmem:[%s2036_s23 + $0xb0] sm:$0xff]  ;;  %1726 = vmatpush3.bf16.msra.mxu1 %v1981_v24 }
  0x1a   : > { %1754 = vrot.lane.b32.xlu1 %v1753_v31, %s1991_s25  ;;  %v348_v49 = vsel %vm333_vm0, %v317_v38, %v318_v44  ;;  %v253_v50 = vrot.slane %v2109_v39, 1  ;;  %v254_v51 = vrot.slane %v2112_v40, 1  ;;  %v1758_v52 = vpack.i.bf16 %v361_v45, %v362_v46 }
  0x1b   : > { %1744 = vrot.lane.b32.xlu0 %v1743_v41, %s1991_s25  ;;  %v347_v53 = vsel %vm333_vm0, %v318_v44, %v319_v47  ;;  %v320_v54 = vrot.slane %v2109_v39, 2  ;;  %v321_v55 = vrot.slane %v2112_v40, 2  ;;  %v369_v60 = vrot.slane %v2068_v17, 3 }
  0x1c   : > { %v280_v58 = vsel %vm268_vm1, %v253_v50, %v254_v51  ;;  %v281_v59 = vsel %vm268_vm1, %v252_v20, %v253_v50  ;;  %v370_v61 = vrot.slane %v2078_v21, 3  ;;  %v1773_v62 = vpack.i.bf16 %v347_v53, %v348_v49 }
  0x1d   : > { %v345_v63 = vsel %vm333_vm0, %v320_v54, %v321_v55  ;;  %v346_v0 = vsel %vm333_vm0, %v319_v47, %v320_v54  ;;  %v384_v2 = vrot.slane %v2063_v14, 3  ;;  %v385_v7 = vrot.slane %v2109_v39, 3 }
  0x1e   : > { %1764 = vrot.lane.b32.xlu1 %v1763_v48, %s1992_s30  ;;  %v1768_v8 = vpack.i.bf16 %v280_v58, %v281_v59  ;;  %v386_v12 = vrot.slane %v2112_v40, 3  ;;  %v426_v19 = vsel %vm398_vm2, %v369_v60, %v370_v61  ;;  %v427_v20 = vsel %vm398_vm2, %v368_v34, %v369_v60 }
  0x1f   : > { %1759 = vrot.lane.b32.xlu0 %v1758_v52, %s1990_s24  ;;  %v382_v22 = vrot.slane %v2055_v10, 3  ;;  %v383_v23 = vrot.slane %v2058_v11, 3  ;;  %v1783_v25 = vpack.i.bf16 %v345_v63, %v346_v0  ;;  %v411_v26 = vsel %vm398_vm2, %v384_v2, %v385_v7 }
  0x20   : > { %v410_v28 = vsel %vm398_vm2, %v385_v7, %v386_v12  ;;  %v240_v30 = vrot.slane %v2166_v13, 1  ;;  %v241_v31 = vrot.slane %v2169_v16, 1  ;;  %v242_v33 = vrot.slane %v2172_v18, 1  ;;  %v2249_v7 = vld [vmem:[%s2036_s23 + $0xb8] sm:$0xff] }
  0x21   : > { %v1778_v34 = vpack.i.bf16 %v426_v19, %v427_v20  ;;  %v412_v41 = vsel %vm398_vm2, %v383_v23, %v384_v2  ;;  %v413_v42 = vsel %vm398_vm2, %v382_v22, %v383_v23  ;;  %v239_v43 = vrot.slane %v2188_v27, 1 }
  0x22   : > { %1774 = vrot.lane.b32.xlu1 %v1773_v62, %s1990_s24  ;;  %v1793_v44 = vpack.i.bf16 %v410_v28, %v411_v26  ;;  %v292_v45 = vsel %vm268_vm1, %v241_v31, %v242_v33  ;;  %v293_v46 = vsel %vm268_vm1, %v240_v30, %v241_v31  ;;  %v255_v47 = vrot.slane %v2200_v35, 1 }
  0x23   : > { %1769 = vrot.lane.b32.xlu0 %v1768_v8, %s1991_s25  ;;  %v256_v48 = vrot.slane %v2203_v36, 1  ;;  %v1788_v49 = vpack.i.bf16 %v412_v41, %v413_v42  ;;  %v294_v50 = vsel %vm268_vm1, %v239_v43, %v240_v30  ;;  %v295_v52 = vsel %vm268_vm1, %v238_v29, %v239_v43  ;;  %v2252_v8 = vld [vmem:[%s2036_s23 + $0xc0] sm:$0xff] }
  0x24   : > { %v306_v53 = vrot.slane %v2188_v27, 2  ;;  %v307_v54 = vrot.slane %v2166_v13, 2  ;;  %v1803_v56 = vpack.i.bf16 %v292_v45, %v293_v46  ;;  %v371_v57 = vrot.slane %v2188_v27, 3 }
  0x25   : > { %v372_v58 = vrot.slane %v2166_v13, 3  ;;  %v278_v59 = vsel %vm268_vm1, %v255_v47, %v256_v48  ;;  %v279_v29 = vsel %vm268_vm1, %v254_v51, %v255_v47  ;;  %v308_v60 = vrot.slane %v2169_v16, 2  ;;  %v2291_v47 = vld [vmem:[%s2036_s23 + $0x50] sm:$0xff] }
  0x26   : > { %1784 = vrot.lane.b32.xlu1 %v1783_v25, %s1990_s24  ;;  %v309_v62 = vrot.slane %v2172_v18, 2  ;;  %v1798_v63 = vpack.i.bf16 %v294_v50, %v295_v52  ;;  %v359_v0 = vsel %vm333_vm0, %v306_v53, %v307_v54  ;;  %v360_v2 = vsel %vm333_vm0, %v305_v37, %v306_v53 }
  0x27   : > { %1779 = vrot.lane.b32.xlu0 %v1778_v34, %s1992_s30  ;;  %v1813_v51 = vpack.i.bf16 %v278_v59, %v279_v29  ;;  %v424_v19 = vsel %vm398_vm2, %v371_v57, %v372_v58  ;;  %v425_v20 = vsel %vm398_vm2, %v370_v61, %v371_v57  ;;  %v358_v23 = vsel %vm333_vm0, %v307_v54, %v308_v60  ;;  %v2298_v54 = vld [vmem:[%s2036_s23 + $0x58] sm:$0xff] }
  0x28   : > { %v357_v37 = vsel %vm333_vm0, %v308_v60, %v309_v62  ;;  %v322_v24 = vrot.slane %v2200_v35, 2  ;;  %v1808_v25 = vpack.i.bf16 %v359_v0, %v360_v2  ;;  %v323_v26 = vrot.slane %v2203_v36, 2  ;;  %v2316_v0 = vld [vmem:[%s2036_s23 + $0x48] sm:$0xff] }
  0x29   : > { %v257_v28 = vrot.slane %v2249_v7, 1  ;;  %v258_v61 = vrot.slane %v2252_v8, 1  ;;  %v1823_v30 = vpack.i.bf16 %v424_v19, %v425_v20  ;;  %v1818_v31 = vpack.i.bf16 %v357_v37, %v358_v23  ;;  %v2322_v20 = vld [vmem:[%s2036_s23 + $0xc8] sm:$0xff]  ;;  %v2325_v37 = vld [vmem:[%s2036_s23 + $0xd0] sm:$0xff] }
  0x2a   : > { %1794 = vrot.lane.b32.xlu1 %v1793_v44, %s1992_s30  ;;  %v344_v34 = vsel %vm333_vm0, %v321_v55, %v322_v24  ;;  %v324_v41 = vrot.slane %v2249_v7, 2  ;;  %v325_v42 = vrot.slane %v2252_v8, 2  ;;  %v373_v43 = vrot.slane %v2169_v16, 3 }
  0x2b   : > { %1789 = vrot.lane.b32.xlu0 %v1788_v49, %s1992_s30  ;;  %v343_v44 = vsel %vm333_vm0, %v322_v24, %v323_v26  ;;  %v276_v45 = vsel %vm268_vm1, %v257_v28, %v258_v61  ;;  %v277_v46 = vsel %vm268_vm1, %v256_v48, %v257_v28  ;;  %v374_v55 = vrot.slane %v2172_v18, 3 }
  0x2c   : > { %v388_v49 = vrot.slane %v2203_v36, 3  ;;  %v389_v50 = vrot.slane %v2249_v7, 3  ;;  %v2944_v52 = vrot.slane %v2252_v8, 3  ;;  %v387_v53 = vrot.slane %v2200_v35, 3 }
  0x2d   : > { %v1833_v48 = vpack.i.bf16 %v343_v44, %v344_v34  ;;  %v1828_v57 = vpack.i.bf16 %v276_v45, %v277_v46  ;;  %v341_v59 = vsel %vm333_vm0, %v324_v41, %v325_v42  ;;  %v342_v29 = vsel %vm333_vm0, %v323_v26, %v324_v41  ;;  %v2347_v44 = vld [vmem:[%s2036_s23 + $0x70] sm:$0xff]  ;;  %v2350_v45 = vld [vmem:[%s2036_s23 + $0x78] sm:$0xff] }
  0x2e   : > { %1804 = vrot.lane.b32.xlu1 %v1803_v56, %s1991_s25  ;;  %v2301_v56 = vld [vmem:[%s2036_s23 + $0x60] sm:$0xff]  ;;  %v422_v60 = vsel %vm398_vm2, %v373_v43, %v374_v55  ;;  %v244_v2 = vrot.slane %v2291_v47, 1  ;;  %v406_v23 = vsel %vm398_vm2, %v389_v50, %v2944_v52  ;;  %v408_v24 = vsel %vm398_vm2, %v387_v53, %v388_v49 }
  0x2f   : > { %1799 = vrot.lane.b32.xlu0 %v1798_v63, %s1991_s25  ;;  %v423_v63 = vsel %vm398_vm2, %v372_v58, %v373_v43  ;;  %v2942_v19 = vrot.slane %v2301_v56, 1  ;;  %v407_v58 = vsel %vm398_vm2, %v388_v49, %v389_v50  ;;  %v1843_v26 = vpack.i.bf16 %v341_v59, %v342_v29 }
  0x30   : > { %v1838_v28 = vpack.i.bf16 %v422_v60, %v423_v63  ;;  %v260_v34 = vrot.slane %v2325_v37, 1  ;;  %v310_v41 = vrot.slane %v2316_v0, 2  ;;  %v311_v43 = vrot.slane %v2291_v47, 2 }
  0x31   : > { %v375_v49 = vrot.slane %v2316_v0, 3  ;;  %v2945_v50 = vrot.slane %v2291_v47, 3  ;;  %v2941_v59 = vrot.slane %v2301_v56, 2  ;;  %v2943_v63 = vrot.slane %v2347_v44, 1 }
  0x32   : > { %1814 = vrot.lane.b32.xlu1 %v1813_v51, %s1991_s25  ;;  %v245_v51 = vrot.slane %v2298_v54, 1 }
  0x33   : > { %1809 = vrot.lane.b32.xlu0 %v1808_v25, %s1990_s24  ;;  %v409_v25 = vsel %vm398_vm2, %v386_v12, %v387_v53  ;;  %v1853_v12 = vpack.i.bf16 %v406_v23, %v407_v58  ;;  %v356_v58 = vsel %vm333_vm0, %v309_v62, %v310_v41 }
  0x34   : > { %v1848_v46 = vpack.i.bf16 %v408_v24, %v409_v25  ;;  %v288_v53 = vsel %vm268_vm1, %v245_v51, %v2942_v19  ;;  %v420_v24 = vsel %vm398_vm2, %v375_v49, %v2945_v50  ;;  %v421_v25 = vsel %vm398_vm2, %v374_v55, %v375_v49  ;;  %v2423_v19 = vld [vmem:[%s2036_s23 + $0xf0] sm:$0xff] }
  0x36   : > { %1824 = vrot.lane.b32.xlu1 %v1823_v30, %s1992_s30  ;;  %v243_v30 = vrot.slane %v2316_v0, 1 }
  0x37   : > { %1819 = vrot.lane.b32.xlu0 %v1818_v31, %s1990_s24  ;;  %v259_v31 = vrot.slane %v2322_v20, 1 }
  0x38   : > { %v290_v29 = vsel %vm268_vm1, %v243_v30, %v244_v2  ;;  %v291_v60 = vsel %vm268_vm1, %v242_v33, %v243_v30  ;;  %v355_v33 = vsel %vm333_vm0, %v310_v41, %v311_v43  ;;  %v2412_v30 = vld [vmem:[%s2036_s23 + $0xd8] sm:$0xff] }
  0x39   : > { %v274_v23 = vsel %vm268_vm1, %v259_v31, %v260_v34  ;;  %v1858_v49 = vpack.i.bf16 %v290_v29, %v291_v60  ;;  %v261_v50 = vrot.slane %v2412_v30, 1 }
  0x3a   : > { %1834 = vrot.lane.b32.xlu1 %v1833_v48, %s1990_s24  ;;  %v289_v48 = vsel %vm268_vm1, %v244_v2, %v245_v51  ;;  %v249_v51 = vrot.slane %v2350_v45, 1  ;;  %v275_v2 = vsel %vm268_vm1, %v258_v61, %v259_v31 }
  0x3b   : > { %1829 = vrot.lane.b32.xlu0 %v1828_v57, %s1991_s25  ;;  %v312_v57 = vrot.slane %v2298_v54, 2  ;;  %v1863_v41 = vpack.i.bf16 %v288_v53, %v289_v48  ;;  %v2430_v53 = vld [vmem:[%s2036_s23 + $0xf8] sm:$0xff]  ;;  %v328_v48 = vrot.slane %v2412_v30, 2 }
  0x3c   : > { %v2396_v61 = vsel %vm268_vm1, %v249_v51, %v250_v15  ;;  %v2402_v62 = vsel %vm268_vm1, %v2943_v63, %v249_v51  ;;  %v2415_v15 = vld [vmem:[%s2036_s23 + $0xe0] sm:$0xff]  ;;  %v327_v51 = vrot.slane %v2325_v37, 2  ;;  %v316_v63 = vrot.slane %v2350_v45, 2 }
  0x3d   : > { %v354_v55 = vsel %vm333_vm0, %v311_v43, %v312_v57  ;;  %v1868_v43 = vpack.i.bf16 %v355_v33, %v356_v58  ;;  %v262_v31 = vrot.slane %v2415_v15, 1  ;;  %v2949_v29 = vrot.slane %v2415_v15, 2 }
  0x3e   : > { %1844 = vrot.lane.b32.xlu1 %v1843_v26, %s1990_s24  ;;  %v353_v26 = vsel %vm333_vm0, %v312_v57, %v2941_v59  ;;  %v1873_v59 = vpack.i.bf16 %v274_v23, %v275_v2  ;;  %v1883_v57 = vpack.i.bf16 %v420_v24, %v421_v25  ;;  %v2442_v60 = vsel %vm333_vm0, %v316_v63, %v317_v38 }
  0x3f   : > { %1839 = vrot.lane.b32.xlu0 %v1838_v28, %s1992_s30  ;;  %v326_v28 = vrot.slane %v2322_v20, 2  ;;  %v1878_v52 = vpack.i.bf16 %v353_v26, %v354_v55  ;;  %v264_v2 = vrot.slane %v2423_v19, 1  ;;  %v2948_v33 = vrot.slane %v2423_v19, 2 }
  0x40   : > { %v265_v58 = vrot.slane %v2430_v53, 1  ;;  %v332_v24 = vrot.slane %v2430_v53, 2  ;;  %v381_v25 = vrot.slane %v2350_v45, 3  ;;  %v272_v26 = vsel %vm268_vm1, %v261_v50, %v262_v31 }
  0x41   : > { %v339_v23 = vsel %vm333_vm0, %v326_v28, %v327_v51  ;;  %v2947_v55 = vrot.slane %v2423_v19, 3 }
  0x42   : > { %1854 = vrot.lane.b32.xlu1 %v1853_v12, %s1992_s30  ;;  %v2946_v12 = vrot.slane %v2347_v44, 2  ;;  %v2482_v38 = vsel %vm268_vm1, %v265_v58, %v234_v9  ;;  %v2503_v9 = vsel %vm398_vm2, %v381_v25, %v382_v22 }
  0x43   : > { %1849 = vrot.lane.b32.xlu0 %v1848_v46, %s1992_s30  ;;  %v340_v46 = vsel %vm333_vm0, %v325_v42, %v326_v28  ;;  %v397_v28 = vrot.slane %v2430_v53, 3 }
  0x44   : > { %v2452_v42 = vsel %vm333_vm0, %v2946_v12, %v316_v63  ;;  %v2950_v63 = vrot.slane %v2347_v44, 3  ;;  %v2488_v12 = vsel %vm333_vm0, %v2948_v33, %v332_v24  ;;  %v393_v33 = vrot.slane %v2412_v30, 3 }
  0x45   : > { %v2520_v22 = vsel %vm398_vm2, %v2947_v55, %v397_v28  ;;  %v337_v55 = vsel %vm333_vm0, %v328_v48, %v2949_v29 }
  0x46   : > { %1864 = vrot.lane.b32.xlu1 %v1863_v41, %s1991_s25  ;;  %v273_v41 = vsel %vm268_vm1, %v260_v34, %v261_v50  ;;  %v2497_v50 = vsel %vm333_vm0, %v332_v24, %v301_v6  ;;  %v2526_v24 = vsel %vm398_vm2, %v397_v28, %v366_v32  ;;  %v338_v32 = vsel %vm333_vm0, %v327_v51, %v328_v48 }
  0x47   : > { %1859 = vrot.lane.b32.xlu0 %v1858_v49, %s1991_s25  ;;  %v2476_v49 = vsel %vm268_vm1, %v264_v2, %v265_v58  ;;  %v1893_v58 = vpack.i.bf16 %v339_v23, %v340_v46  ;;  %v1888_v34 = vpack.i.bf16 %v272_v26, %v273_v41  ;;  %v392_v28 = vrot.slane %v2325_v37, 3  ;;  %v2551_v26 = vld [vmem:[%s2036_s23 + $0x68] sm:$0xff] }
  0x48   : > { %v394_v6 = vrot.slane %v2415_v15, 3  ;;  %v2951_v46 = vrot.slane %v2291_v47, 3  ;;  %v1903_v51 = vpack.i.bf16 %v337_v55, %v338_v32  ;;  %v2567_v55 = vld [vmem:[%s2036_s23 + $0xe8] sm:$0xff] }
  0x49   : > { %v403_v29 = vsel %vm398_vm2, %v392_v28, %v393_v33 }
  0x4a   : > { %1874 = vrot.lane.b32.xlu1 %v1873_v59, %s1991_s25  ;;  %v2509_v59 = vsel %vm398_vm2, %v2950_v63, %v381_v25  ;;  %v378_v25 = vrot.slane %v2301_v56, 3  ;;  %v402_v41 = vsel %vm398_vm2, %v393_v33, %v394_v6  ;;  %v263_v33 = vrot.slane %v2567_v55, 1 }
  0x4b   : > { %1869 = vrot.lane.b32.xlu0 %v1868_v43, %s1990_s24  ;;  %v377_v43 = vrot.slane %v2298_v54, 3 }
  0x4d   : > { %v419_v23 = vsel %vm398_vm2, %v2951_v46, %v377_v43 }
  0x4e   : > { %1884 = vrot.lane.b32.xlu1 %v1883_v57, %s1992_s30  ;;  %v418_v57 = vsel %vm398_vm2, %v377_v43, %v378_v25  ;;  %v2952_v43 = vrot.slane %v2252_v8, 3 }
  0x4f   : > { %1879 = vrot.lane.b32.xlu0 %v1878_v52, %s1990_s24  ;;  %v391_v52 = vrot.slane %v2322_v20, 3  ;;  %v1898_v48 = vpack.i.bf16 %v418_v57, %v419_v23  ;;  %v2953_v57 = vrot.slane %v2347_v44, 1  ;;  %v2954_v23 = vrot.slane %v2301_v56, 1 }
  0x51   : > { %v404_v63 = vsel %vm398_vm2, %v391_v52, %v392_v28  ;;  %v405_v46 = vsel %vm398_vm2, %v2952_v43, %v391_v52  ;;  %v314_v43 = vrot.slane %v2551_v26, 2 }
  0x52   : > { %1894 = vrot.lane.b32.xlu1 %v1893_v58, %s1990_s24  ;;  %v247_v58 = vrot.slane %v2551_v26, 1  ;;  %v1908_v32 = vpack.i.bf16 %v404_v63, %v405_v46  ;;  %v270_v63 = vsel %vm268_vm1, %v263_v33, %v264_v2  ;;  %v2957_v2 = vpack.i.bf16 %v2396_v61, %v2402_v62 }
  0x53   : > { %1889 = vrot.lane.b32.xlu0 %v1888_v34, %s1991_s25  ;;  %v1913_v34 = vpack.i.bf16 %v402_v41, %v403_v29  ;;  %v2955_v41 = vrot.slane %v2347_v44, 2  ;;  %v2959_v61 = vrot.slane %v2423_v19, 2 }
  0x54   : > { %v286_v28 = vsel %vm268_vm1, %v247_v58, %v2953_v57  ;;  %v287_v52 = vsel %vm268_vm1, %v2954_v23, %v247_v58  ;;  %v2956_v58 = vrot.slane %v2301_v56, 2  ;;  %v330_v23 = vrot.slane %v2567_v55, 2 }
  0x55   : > { %v1918_v29 = vpack.i.bf16 %v286_v28, %v287_v52  ;;  %v351_v46 = vsel %vm333_vm0, %v314_v43, %v2955_v41  ;;  %v2963_v41 = vrot.slane %v2423_v19, 3 }
  0x56   : > { %1904 = vrot.lane.b32.xlu1 %v1903_v51, %s1990_s24  ;;  %v271_v51 = vsel %vm268_vm1, %v262_v31, %v263_v33  ;;  %v2958_v33 = vrot.slane %v2347_v44, 3  ;;  %v335_v62 = vsel %vm333_vm0, %v330_v23, %v2959_v61 }
  0x57   : > { %1899 = vrot.lane.b32.xlu0 %v1898_v48, %s1992_s30  ;;  %v379_v48 = vrot.slane %v2551_v26, 3 }
  0x59   : > { %v416_v57 = vsel %vm398_vm2, %v379_v48, %v2958_v33  ;;  %v417_v28 = vsel %vm398_vm2, %v378_v25, %v379_v48  ;;  %v2962_v48 = vpack.i.bf16 %v2482_v38, %v2476_v49  ;;  %v2966_v49 = vpack.i.bf16 %v2526_v24, %v2520_v22 }
  0x5a   : > { %1914 = vrot.lane.b32.xlu1 %v1913_v34, %s1992_s30  ;;  %v352_v34 = vsel %vm333_vm0, %v2956_v58, %v314_v43  ;;  %v1943_v52 = vpack.i.bf16 %v416_v57, %v417_v28  ;;  %v2960_v43 = vrot.slane %v2415_v15, 2 }
  0x5b   : > { %1909 = vrot.lane.b32.xlu0 %v1908_v32, %s1992_s30  ;;  %v1933_v32 = vpack.i.bf16 %v270_v63, %v271_v51  ;;  %v1928_v31 = vpack.i.bf16 %v351_v46, %v352_v34  ;;  %v2961_v63 = vpack.i.bf16 %v2442_v60, %v2452_v42  ;;  %v395_v51 = vrot.slane %v2567_v55, 3 }
  0x5c   : > { %v2964_v60 = vpack.i.bf16 %v2497_v50, %v2488_v12  ;;  %v2965_v42 = vpack.i.bf16 %v2503_v9, %v2509_v59 }
  0x5d   : > { %v400_v46 = vsel %vm398_vm2, %v395_v51, %v2963_v41  ;;  %v401_v58 = vsel %vm398_vm2, %v394_v6, %v395_v51 }
  0x5e   : > { %1924 = vrot.lane.b32.xlu1 %v2957_v2, %s1991_s25  ;;  %v1968_v38 = vpack.i.bf16 %v400_v46, %v401_v58 }
  0x5f   : > { %1919 = vrot.lane.b32.xlu0 %v1918_v29, %s1991_s25  ;;  %v336_v29 = vsel %vm333_vm0, %v2960_v43, %v330_v23 }
  0x60   : > { %v1953_v25 = vpack.i.bf16 %v335_v62, %v336_v29 }
  0x62   : > { %1934 = vrot.lane.b32.xlu1 %v1933_v32, %s1991_s25 }
  0x63   : > { %1929 = vrot.lane.b32.xlu0 %v1928_v31, %s1990_s24 }
  0x66   : > { %1944 = vrot.lane.b32.xlu1 %v1943_v52, %s1992_s30 }
  0x67   : > { %1939 = vrot.lane.b32.xlu0 %v2961_v63, %s1990_s24 }
  0x6a   : > { %1954 = vrot.lane.b32.xlu1 %v1953_v25, %s1990_s24 }
  0x6b   : > { %1949 = vrot.lane.b32.xlu0 %v2962_v48, %s1991_s25 }
  0x6e   : > { %1964 = vrot.lane.b32.xlu1 %v2964_v60, %s1990_s24 }
  0x6f   : > { %1959 = vrot.lane.b32.xlu0 %v2965_v42, %s1992_s30 }
  0x72   : > { %1974 = vrot.lane.b32.xlu1 %v2966_v49, %s1992_s30 }
  0x73   : > { %1969 = vrot.lane.b32.xlu0 %v1968_v38, %s1992_s30 }
  0x88   : > { %v1750_v1 = vpop.permute.xlu1 %1749 }
  0x89   : > { %v1740_v6 = vpop.permute.xlu0 %1739  ;;  %v1752_v32 = vunpack.i.h.bf16 %v1750_v1  ;;  %v1751_v31 = vunpack.i.l.bf16 %v1750_v1 }
  0x8a   : > { %v1742_v34 = vunpack.i.h.bf16 %v1740_v6  ;;  %v1741_v2 = vunpack.i.l.bf16 %v1740_v6 }
  0x8c   : > { %v1755_v12 = vpop.permute.xlu1 %1754  ;;  %v817_v9 = vsel %vm815_vm3, %v2042_v4, %v1742_v34  ;;  %v816_v59 = vsel %vm815_vm3, %v2039_v3, %v1741_v2 }
  0x8d   : > { %v1745_v50 = vpop.permute.xlu0 %1744  ;;  %v849_v28 = vsel %vm848_vm4, %v816_v59, %v1751_v31  ;;  %v850_v23 = vsel %vm848_vm4, %v817_v9, %v1752_v32  ;;  %v1757_v43 = vunpack.i.h.bf16 %v1755_v12  ;;  %v1756_v48 = vunpack.i.l.bf16 %v1755_v12 }
  0x8e   : > { %v1747_v29 = vunpack.i.h.bf16 %v1745_v50  ;;  %v1746_v3 = vunpack.i.l.bf16 %v1745_v50 }
  0x8f   : > { %v833_v58 = vsel %vm815_vm3, %v2058_v11, %v1757_v43  ;;  %v832_v11 = vsel %vm815_vm3, %v2055_v10, %v1756_v48 }
  0x90   : > { %v1765_v22 = vpop.permute.xlu1 %1764  ;;  %v819_v60 = vsel %vm815_vm3, %v2068_v17, %v1747_v29  ;;  %v818_v42 = vsel %vm815_vm3, %v2045_v5, %v1746_v3 }
  0x91   : > { %v1767_v24 = vunpack.i.h.bf16 %v1765_v22  ;;  %v1766_v33 = vunpack.i.l.bf16 %v1765_v22  ;;  %v1760_v57 = vpop.permute.xlu0 %1759 }
  0x92   : > { %v1762_v63 = vunpack.i.h.bf16 %v1760_v57  ;;  %v1761_v51 = vunpack.i.l.bf16 %v1760_v57 }
  0x93   : > { %v882_v52 = vsel %vm881_vm5, %v849_v28, %v1766_v33  ;;  %v883_v61 = vsel %vm881_vm5, %v850_v23, %v1767_v24 }
  0x94   : > { %v1775_v62 = vpop.permute.xlu1 %1774  ;;  %v914_v4 = vpack.c.bf16 %v883_v61, %v882_v52  ;;  %v851_v50 = vsel %vm848_vm4, %v818_v42, %v1761_v51  ;;  %v852_v12 = vsel %vm848_vm4, %v819_v60, %v1762_v63 }
  0x95   : > { %v1770_v25 = vpop.permute.xlu0 %1769  ;;  %v1777_v32 = vunpack.i.h.bf16 %v1775_v62  ;;  %v1776_v31 = vunpack.i.l.bf16 %v1775_v62 }
  0x96   : > { %1687 = vmatprep.mubr.msk.bf16.mxu0 %vm962_vm6, %v914_v4  ;;  %v1772_v41 = vunpack.i.h.bf16 %v1770_v25  ;;  %v1771_v38 = vunpack.i.l.bf16 %v1770_v25 }
  0x97   : > { %v865_v4 = vsel %vm848_vm4, %v832_v11, %v1776_v31 }
  0x98   : > { %v1785_v46 = vpop.permute.xlu1 %1784  ;;  %v835_v17 = vsel %vm815_vm3, %v2109_v39, %v1772_v41  ;;  %v834_v22 = vsel %vm815_vm3, %v2063_v14, %v1771_v38  ;;  %v866_v14 = vsel %vm848_vm4, %v833_v58, %v1777_v32 }
  0x99   : > { %v1780_v49 = vpop.permute.xlu0 %1779  ;;  %v1787_v1 = vunpack.i.h.bf16 %v1785_v46  ;;  %v1786_v6 = vunpack.i.l.bf16 %v1785_v46 }
  0x9a   : > { %v1782_v34 = vunpack.i.h.bf16 %v1780_v49  ;;  %v1781_v2 = vunpack.i.l.bf16 %v1780_v49 }
  0x9b   : > { %v867_v23 = vsel %vm848_vm4, %v834_v22, %v1786_v6  ;;  %v868_v52 = vsel %vm848_vm4, %v835_v17, %v1787_v1 }
  0x9c   : > { %v884_v5 = vsel %vm881_vm5, %v851_v50, %v1781_v2  ;;  %v885_v9 = vsel %vm881_vm5, %v852_v12, %v1782_v34  ;;  %v1795_v59 = vpop.permute.xlu1 %1794 }
  0x9d   : > { %v915_v24 = vpack.c.bf16 %v885_v9, %v884_v5  ;;  %v1797_v33 = vunpack.i.h.bf16 %v1795_v59  ;;  %v1796_v57 = vunpack.i.l.bf16 %v1795_v59  ;;  %v1790_v28 = vpop.permute.xlu0 %1789 }
  0x9e   : > { %v1792_v10 = vunpack.i.h.bf16 %v1790_v28  ;;  %v1791_v61 = vunpack.i.l.bf16 %v1790_v28 }
  0x9f   : > { %v900_v39 = vsel %vm881_vm5, %v867_v23, %v1796_v57  ;;  %v901_v62 = vsel %vm881_vm5, %v868_v52, %v1797_v33  ;;  %1688 = vmatmul.mubr.msk.bf16.vlgmr.msra.gmra.mrb[0].mxu0 %vm962_vm6, %v915_v24 }
  0xa0   : > { %v923_v43 = vpack.c.bf16 %v901_v62, %v900_v39  ;;  %v1805_v29 = vpop.permute.xlu1 %1804  ;;  %v898_v3 = vsel %vm881_vm5, %v865_v4, %v1791_v61  ;;  %v899_v25 = vsel %vm881_vm5, %v866_v14, %v1792_v10 }
  0xa1   : > { %v1800_v63 = vpop.permute.xlu0 %1799  ;;  %v922_v51 = vpack.c.bf16 %v899_v25, %v898_v3  ;;  %v1807_v5 = vunpack.i.h.bf16 %v1805_v29  ;;  %v1806_v9 = vunpack.i.l.bf16 %v1805_v29 }
  0xa2   : > { %v1802_v41 = vunpack.i.h.bf16 %v1800_v63  ;;  %v1801_v46 = vunpack.i.l.bf16 %v1800_v63 }
  0xa3   : > { %1703 = vmatprep.mubr.msk.bf16.mxu1 %vm962_vm6, %v922_v51  ;;  %v823_v28 = vsel %vm815_vm3, %v2169_v16, %v1807_v5  ;;  %v822_v23 = vsel %vm815_vm3, %v2166_v13, %v1806_v9 }
  0xa4   : > { %1704 = vmatmul.mubr.msk.bf16.vlgmr.msra.gmra.mrb[0].mxu1 %vm962_vm6, %v923_v43  ;;  %v1815_v48 = vpop.permute.xlu1 %1814  ;;  %v821_v58 = vsel %vm815_vm3, %v2188_v27, %v1802_v41  ;;  %v820_v1 = vsel %vm815_vm3, %v2078_v21, %v1801_v46 }
  0xa5   : > { %v1810_v60 = vpop.permute.xlu0 %1809  ;;  %v1817_v59 = vunpack.i.h.bf16 %v1815_v48  ;;  %v1816_v24 = vunpack.i.l.bf16 %v1815_v48 }
  0xa6   : > { %v1812_v42 = vunpack.i.h.bf16 %v1810_v60  ;;  %v1811_v38 = vunpack.i.l.bf16 %v1810_v60 }
  0xa7   : > { %v837_v52 = vsel %vm815_vm3, %v2200_v35, %v1817_v59  ;;  %v836_v16 = vsel %vm815_vm3, %v2112_v40, %v1816_v24 }
  0xa8   : > { %v1825_v49 = vpop.permute.xlu1 %1824  ;;  %v853_v50 = vsel %vm848_vm4, %v820_v1, %v1811_v38  ;;  %v854_v12 = vsel %vm848_vm4, %v821_v58, %v1812_v42 }
  0xa9   : > { %v1827_v6 = vunpack.i.h.bf16 %v1825_v49  ;;  %v1826_v34 = vunpack.i.l.bf16 %v1825_v49  ;;  %v1820_v2 = vpop.permute.xlu0 %1819 }
  0xaa   : > { %v1822_v21 = vunpack.i.h.bf16 %v1820_v2  ;;  %v1821_v22 = vunpack.i.l.bf16 %v1820_v2 }
  0xab   : > { %v886_v32 = vsel %vm881_vm5, %v853_v50, %v1826_v34  ;;  %v887_v31 = vsel %vm881_vm5, %v854_v12, %v1827_v6 }
  0xac   : > { %v916_v11 = vpack.c.bf16 %v887_v31, %v886_v32  ;;  %v1835_v17 = vpop.permute.xlu1 %1834  ;;  %v856_v43 = vsel %vm848_vm4, %v823_v28, %v1822_v21  ;;  %v855_v29 = vsel %vm848_vm4, %v822_v23, %v1821_v22 }
  0xad   : > { %v1830_v27 = vpop.permute.xlu0 %1829  ;;  %v1837_v3 = vunpack.i.h.bf16 %v1835_v17  ;;  %v1836_v25 = vunpack.i.l.bf16 %v1835_v17 }
  0xae   : > { %1691 = vmatprep.mubr.msk.bf16.mxu0 %vm962_vm6, %v916_v11  ;;  %v1832_v33 = vunpack.i.h.bf16 %v1830_v27  ;;  %v1831_v10 = vunpack.i.l.bf16 %v1830_v27 }
  0xaf   : > { %v870_v1 = vsel %vm848_vm4, %v837_v52, %v1837_v3 }
  0xb0   : > { %v1845_v57 = vpop.permute.xlu1 %1844  ;;  %v839_v13 = vsel %vm815_vm3, %v2249_v7, %v1832_v33  ;;  %v838_v48 = vsel %vm815_vm3, %v2203_v36, %v1831_v10  ;;  %v869_v7 = vsel %vm848_vm4, %v836_v16, %v1836_v25 }
  0xb1   : > { %v1840_v61 = vpop.permute.xlu0 %1839  ;;  %v1847_v39 = vunpack.i.h.bf16 %v1845_v57  ;;  %v1846_v62 = vunpack.i.l.bf16 %v1845_v57 }
  0xb2   : > { %v1842_v4 = vunpack.i.h.bf16 %v1840_v61  ;;  %v1841_v14 = vunpack.i.l.bf16 %v1840_v61 }
  0xb3   : > { %v871_v38 = vsel %vm848_vm4, %v838_v48, %v1846_v62  ;;  %v872_v49 = vsel %vm848_vm4, %v839_v13, %v1847_v39 }
  0xb4   : > { %v888_v35 = vsel %vm881_vm5, %v855_v29, %v1841_v14  ;;  %v889_v63 = vsel %vm881_vm5, %v856_v43, %v1842_v4  ;;  %v1855_v51 = vpop.permute.xlu1 %1854 }
  0xb5   : > { %v917_v41 = vpack.c.bf16 %v889_v63, %v888_v35  ;;  %v1857_v46 = vunpack.i.h.bf16 %v1855_v51  ;;  %v1856_v60 = vunpack.i.l.bf16 %v1855_v51  ;;  %v1850_v42 = vpop.permute.xlu0 %1849 }
  0xb6   : > { %v1852_v40 = vunpack.i.h.bf16 %v1850_v42  ;;  %v1851_v58 = vunpack.i.l.bf16 %v1850_v42 }
  0xb7   : > { %v904_v6 = vsel %vm881_vm5, %v871_v38, %v1856_v60  ;;  %v905_v34 = vsel %vm881_vm5, %v872_v49, %v1857_v46  ;;  %1692 = vmatmul.mubr.msk.bf16.gmra.mrb[4].mxu0 %vm962_vm6, %v917_v41 }
  0xb8   : > { %v925_v36 = vpack.c.bf16 %v905_v34, %v904_v6  ;;  %v903_v2 = vsel %vm881_vm5, %v870_v1, %v1852_v40  ;;  %v902_v50 = vsel %vm881_vm5, %v869_v7, %v1851_v58  ;;  %v1865_v12 = vpop.permute.xlu1 %1864 }
  0xb9   : > { %v924_v32 = vpack.c.bf16 %v903_v2, %v902_v50  ;;  %v1860_v31 = vpop.permute.xlu0 %1859  ;;  %v1867_v4 = vunpack.i.h.bf16 %v1865_v12  ;;  %v1866_v14 = vunpack.i.l.bf16 %v1865_v12 }
  0xba   : > { %v1862_v17 = vunpack.i.h.bf16 %v1860_v31  ;;  %v1861_v5 = vunpack.i.l.bf16 %v1860_v31 }
  0xbb   : > { %1707 = vmatprep.mubr.msk.bf16.mxu1 %vm962_vm6, %v924_v32  ;;  %v827_v13 = vsel %vm815_vm3, %v2298_v54, %v1867_v4  ;;  %v826_v35 = vsel %vm815_vm3, %v2291_v47, %v1866_v14 }
  0xbc   : > { %1708 = vmatmul.mubr.msk.bf16.gmra.mrb[4].mxu1 %vm962_vm6, %v925_v36  ;;  %v1875_v11 = vpop.permute.xlu1 %1874  ;;  %v825_v22 = vsel %vm815_vm3, %v2316_v0, %v1862_v17  ;;  %v824_v24 = vsel %vm815_vm3, %v2172_v18, %v1861_v5 }
  0xbd   : > { %v1870_v9 = vpop.permute.xlu0 %1869  ;;  %v1877_v43 = vunpack.i.h.bf16 %v1875_v11  ;;  %v1876_v3 = vunpack.i.l.bf16 %v1875_v11 }
  0xbe   : > { %v1872_v59 = vunpack.i.h.bf16 %v1870_v9  ;;  %v1871_v27 = vunpack.i.l.bf16 %v1870_v9 }
  0xbf   : > { %v841_v63 = vsel %vm815_vm3, %v2322_v20, %v1877_v43  ;;  %v840_v54 = vsel %vm815_vm3, %v2252_v8, %v1876_v3 }
  0xc0   : > { %v1885_v21 = vpop.permute.xlu1 %1884  ;;  %v857_v23 = vsel %vm848_vm4, %v824_v24, %v1871_v27  ;;  %v858_v52 = vsel %vm848_vm4, %v825_v22, %v1872_v59 }
  0xc1   : > { %v1887_v33 = vunpack.i.h.bf16 %v1885_v21  ;;  %v1886_v57 = vunpack.i.l.bf16 %v1885_v21  ;;  %v1880_v28 = vpop.permute.xlu0 %1879 }
  0xc2   : > { %v1882_v18 = vunpack.i.h.bf16 %v1880_v28  ;;  %v1881_v29 = vunpack.i.l.bf16 %v1880_v28 }
  0xc3   : > { %v890_v10 = vsel %vm881_vm5, %v857_v23, %v1886_v57  ;;  %v891_v61 = vsel %vm881_vm5, %v858_v52, %v1887_v33 }
  0xc4   : > { %v918_v39 = vpack.c.bf16 %v891_v61, %v890_v10  ;;  %v1895_v62 = vpop.permute.xlu1 %1894  ;;  %v860_v38 = vsel %vm848_vm4, %v827_v13, %v1882_v18  ;;  %v859_v49 = vsel %vm848_vm4, %v826_v35, %v1881_v29 }
  0xc5   : > { %v1890_v0 = vpop.permute.xlu0 %1889  ;;  %v1897_v40 = vunpack.i.h.bf16 %v1895_v62  ;;  %v1896_v58 = vunpack.i.l.bf16 %v1895_v62 }
  0xc6   : > { %1695 = vmatprep.mubr.msk.bf16.mxu0 %vm962_vm6, %v918_v39  ;;  %v1892_v25 = vunpack.i.h.bf16 %v1890_v0  ;;  %v1891_v51 = vunpack.i.l.bf16 %v1890_v0 }
  0xc7   : > { %v874_v11 = vsel %vm848_vm4, %v841_v63, %v1897_v40 }
  0xc8   : > { %v1905_v16 = vpop.permute.xlu1 %1904  ;;  %v843_v47 = vsel %vm815_vm3, %v2412_v30, %v1892_v25  ;;  %v842_v6 = vsel %vm815_vm3, %v2325_v37, %v1891_v51  ;;  %v873_v30 = vsel %vm848_vm4, %v840_v54, %v1896_v58 }
  0xc9   : > { %v1900_v48 = vpop.permute.xlu0 %1899  ;;  %v1907_v41 = vunpack.i.h.bf16 %v1905_v16  ;;  %v1906_v46 = vunpack.i.l.bf16 %v1905_v16 }
  0xca   : > { %v1902_v60 = vunpack.i.h.bf16 %v1900_v48  ;;  %v1901_v42 = vunpack.i.l.bf16 %v1900_v48 }
  0xcb   : > { %v875_v12 = vsel %vm848_vm4, %v842_v6, %v1906_v46  ;;  %v876_v32 = vsel %vm848_vm4, %v843_v47, %v1907_v41 }
  0xcc   : > { %v892_v20 = vsel %vm881_vm5, %v859_v49, %v1901_v42  ;;  %v893_v7 = vsel %vm881_vm5, %v860_v38, %v1902_v60  ;;  %v1915_v1 = vpop.permute.xlu1 %1914 }
  0xcd   : > { %v919_v34 = vpack.c.bf16 %v893_v7, %v892_v20  ;;  %v1917_v36 = vunpack.i.h.bf16 %v1915_v1  ;;  %v1916_v2 = vunpack.i.l.bf16 %v1915_v1  ;;  %v1910_v50 = vpop.permute.xlu0 %1909 }
  0xce   : > { %v1912_v8 = vunpack.i.h.bf16 %v1910_v50  ;;  %v1911_v31 = vunpack.i.l.bf16 %v1910_v50 }
  0xcf   : > { %v908_v17 = vsel %vm881_vm5, %v875_v12, %v1916_v2  ;;  %v909_v5 = vsel %vm881_vm5, %v876_v32, %v1917_v36  ;;  %1696 = vmatmul.mubr.msk.bf16.gmra.mrb[8].mxu0 %vm962_vm6, %v919_v34 }
  0xd0   : > { %v927_v37 = vpack.c.bf16 %v909_v5, %v908_v17  ;;  %v907_v9 = vsel %vm881_vm5, %v874_v11, %v1912_v8  ;;  %v906_v59 = vsel %vm881_vm5, %v873_v30, %v1911_v31  ;;  %v1925_v27 = vpop.permute.xlu1 %1924 }
  0xd1   : > { %v926_v21 = vpack.c.bf16 %v907_v9, %v906_v59  ;;  %v1920_v22 = vpop.permute.xlu0 %1919  ;;  %v1927_v16 = vunpack.i.h.bf16 %v1925_v27  ;;  %v1926_v13 = vunpack.i.l.bf16 %v1925_v27 }
  0xd2   : > { %v1922_v33 = vunpack.i.h.bf16 %v1920_v22  ;;  %v1921_v57 = vunpack.i.l.bf16 %v1920_v22 }
  0xd3   : > { %1711 = vmatprep.mubr.msk.bf16.mxu1 %vm962_vm6, %v926_v21  ;;  %v831_v46 = vsel %vm815_vm3, %v2350_v45, %v1927_v16  ;;  %v830_v60 = vsel %vm815_vm3, %v2347_v44, %v1926_v13  ;;  %v2799_v21 = vld [vmem:[%s2939_s3] sm:$0xff] }
  0xd4   : > { %1712 = vmatmul.mubr.msk.bf16.gmra.mrb[8].mxu1 %vm962_vm6, %v927_v37  ;;  %v1935_v24 = vpop.permute.xlu1 %1934  ;;  %v829_v61 = vsel %vm815_vm3, %v2551_v26, %v1922_v33  ;;  %v828_v39 = vsel %vm815_vm3, %v2301_v56, %v1921_v57 }
  0xd5   : > { %v1930_v28 = vpop.permute.xlu0 %1929  ;;  %v1937_v35 = vunpack.i.h.bf16 %v1935_v24  ;;  %v1936_v51 = vunpack.i.l.bf16 %v1935_v24 }
  0xd6   : > { %v1932_v23 = vunpack.i.h.bf16 %v1930_v28  ;;  %v1931_v52 = vunpack.i.l.bf16 %v1930_v28 }
  0xd7   : > { %v845_v42 = vsel %vm815_vm3, %v2567_v55, %v1937_v35  ;;  %v844_v45 = vsel %vm815_vm3, %v2415_v15, %v1936_v51 }
  0xd8   : > { %v1945_v10 = vpop.permute.xlu1 %1944  ;;  %v861_v43 = vsel %vm848_vm4, %v828_v39, %v1931_v52  ;;  %v862_v0 = vsel %vm848_vm4, %v829_v61, %v1932_v23 }
  0xd9   : > { %v1947_v62 = vunpack.i.h.bf16 %v1945_v10  ;;  %v1946_v4 = vunpack.i.l.bf16 %v1945_v10  ;;  %v1940_v14 = vpop.permute.xlu0 %1939 }
  0xda   : > { %v1942_v56 = vunpack.i.h.bf16 %v1940_v14  ;;  %v1941_v63 = vunpack.i.l.bf16 %v1940_v14 }
  0xdb   : > { %v894_v18 = vsel %vm881_vm5, %v861_v43, %v1946_v4  ;;  %v895_v29 = vsel %vm881_vm5, %v862_v0, %v1947_v62 }
  0xdc   : > { %v920_v3 = vpack.c.bf16 %v895_v29, %v894_v18  ;;  %v1955_v25 = vpop.permute.xlu1 %1954  ;;  %v864_v20 = vsel %vm848_vm4, %v831_v46, %v1942_v56  ;;  %v863_v7 = vsel %vm848_vm4, %v830_v60, %v1941_v63 }
  0xdd   : > { %v1950_v26 = vpop.permute.xlu0 %1949  ;;  %v1957_v1 = vunpack.i.h.bf16 %v1955_v25  ;;  %v1956_v6 = vunpack.i.l.bf16 %v1955_v25 }
  0xde   : > { %1699 = vmatprep.mubr.msk.bf16.mxu0 %vm962_vm6, %v920_v3  ;;  %v1952_v48 = vunpack.i.h.bf16 %v1950_v26  ;;  %v1951_v38 = vunpack.i.l.bf16 %v1950_v26 }
  0xdf   : > { %v878_v17 = vsel %vm848_vm4, %v845_v42, %v1957_v1 }
  0xe0   : > { %v1965_v41 = vpop.permute.xlu1 %1964  ;;  %v847_v44 = vsel %vm815_vm3, %v2430_v53, %v1952_v48  ;;  %v846_v2 = vsel %vm815_vm3, %v2423_v19, %v1951_v38  ;;  %v877_v53 = vsel %vm848_vm4, %v844_v45, %v1956_v6 }
  0xe1   : > { %v1960_v49 = vpop.permute.xlu0 %1959  ;;  %v1967_v40 = vunpack.i.h.bf16 %v1965_v41  ;;  %v1966_v58 = vunpack.i.l.bf16 %v1965_v41 }
  0xe2   : > { %v1962_v54 = vunpack.i.h.bf16 %v1960_v49  ;;  %v1961_v47 = vunpack.i.l.bf16 %v1960_v49 }
  0xe3   : > { %v879_v31 = vsel %vm848_vm4, %v846_v2, %v1966_v58  ;;  %v880_v30 = vsel %vm848_vm4, %v847_v44, %v1967_v40 }
  0xe4   : > { %v896_v55 = vsel %vm881_vm5, %v863_v7, %v1961_v47  ;;  %v897_v34 = vsel %vm881_vm5, %v864_v20, %v1962_v54  ;;  %v1975_v36 = vpop.permute.xlu1 %1974  ;;  %v2812_v7 = vld [vmem:[%s2938_s2] ss:$0 sm:$0xff] }
  0xe5   : > { %v921_v50 = vpack.c.bf16 %v897_v34, %v896_v55  ;;  %v1977_v12 = vunpack.i.h.bf16 %v1975_v36  ;;  %v1976_v32 = vunpack.i.l.bf16 %v1975_v36  ;;  %v1970_v8 = vpop.permute.xlu0 %1969 }
  0xe6   : > { %v1972_v15 = vunpack.i.h.bf16 %v1970_v8  ;;  %v1971_v11 = vunpack.i.l.bf16 %v1970_v8 }
  0xe7   : > { %v912_v5 = vsel %vm881_vm5, %v879_v31, %v1976_v32  ;;  %v913_v37 = vsel %vm881_vm5, %v880_v30, %v1977_v12  ;;  %1700 = vmatmul.mubr.msk.bf16.gmra.mrb[12].mxu0 %vm962_vm6, %v921_v50 }
  0xe8   : > { %v929_v19 = vpack.c.bf16 %v913_v37, %v912_v5  ;;  %v911_v9 = vsel %vm881_vm5, %v878_v17, %v1972_v15  ;;  %v910_v59 = vsel %vm881_vm5, %v877_v53, %v1971_v11 }
  0xe9   : > { %v928_v27 = vpack.c.bf16 %v911_v9, %v910_v59 }
  0xeb   : > { %1715 = vmatprep.mubr.msk.bf16.mxu1 %vm962_vm6, %v928_v27 }
  0xec   : > { %1716 = vmatmul.mubr.msk.bf16.gmra.mrb[12].mxu1 %vm962_vm6, %v929_v19 }
 0x172   : > { %v1689_v22 = vpop.f32.mrb[0].mxu0 }
 0x173   : > { %v1175_v24 = vadd.f32 %v1689_v22, %v2799_v21  ;;  %v1045_v33 = vpop.f32.mrb[1].mxu0 }
 0x174   : > { %v1173_v57 = vadd.f32 %v2799_v21, %v1045_v33  ;;  %v1690_v28 = vpop.f32.mrb[2].mxu0 }
 0x175   : > { %v1217_v23 = vrot.slane %v1175_v24, 4  ;;  %v1176_v52 = vadd.f32 %v1690_v28, %v2799_v21  ;;  %v1048_v10 = vpop.f32.mrb[3].mxu0 }
 0x176   : > { %v1205_v61 = vrot.slane %v1173_v57, 4  ;;  %v1174_v39 = vadd.f32 %v2799_v21, %v1048_v10 }
 0x177   : > { %v1218_v62 = vmax.f32 %v1175_v24, %v1217_v23  ;;  %v1223_v4 = vrot.slane %v1176_v52, 4  ;;  %v1705_v14 = vpop.f32.mrb[0].mxu1 }
 0x178   : > { %v1206_v43 = vmax.f32 %v1173_v57, %v1205_v61  ;;  %v1211_v0 = vrot.slane %v1174_v39, 4  ;;  %v1191_v18 = vadd.f32 %v1705_v14, %v2799_v21  ;;  %v1109_v29 = vpop.f32.mrb[1].mxu1 }
 0x179   : > { %v1219_v3 = vrot.slane %v1218_v62, 2  ;;  %v1224_v25 = vmax.f32 %v1176_v52, %v1223_v4  ;;  %v1189_v16 = vadd.f32 %v2799_v21, %v1109_v29  ;;  %v1706_v13 = vpop.f32.mrb[2].mxu1 }
 0x17a   : > { %v1207_v35 = vrot.slane %v1206_v43, 2  ;;  %v1212_v26 = vmax.f32 %v1174_v39, %v1211_v0  ;;  %v1313_v56 = vrot.slane %v1191_v18, 4  ;;  %v1192_v63 = vadd.f32 %v1706_v13, %v2799_v21  ;;  %v1112_v51 = vpop.f32.mrb[3].mxu1 }
 0x17b   : > { %v1220_v48 = vmax.f32 %v1218_v62, %v1219_v3  ;;  %v1225_v41 = vrot.slane %v1224_v25, 2  ;;  %v1301_v46 = vrot.slane %v1189_v16, 4  ;;  %v1190_v60 = vadd.f32 %v2799_v21, %v1112_v51 }
 0x17c   : > { %v1208_v42 = vmax.f32 %v1206_v43, %v1207_v35  ;;  %v1213_v38 = vrot.slane %v1212_v26, 2  ;;  %v1314_v49 = vmax.f32 %v1191_v18, %v1313_v56  ;;  %v1319_v40 = vrot.slane %v1192_v63, 4 }
 0x17d   : > { %v1221_v58 = vrot.slane %v1220_v48, 1  ;;  %v1226_v54 = vmax.f32 %v1224_v25, %v1225_v41  ;;  %v1302_v47 = vmax.f32 %v1189_v16, %v1301_v46  ;;  %v1307_v20 = vrot.slane %v1190_v60, 4 }
 0x17e   : > { %v1209_v1 = vrot.slane %v1208_v42, 1  ;;  %v1214_v6 = vmax.f32 %v1212_v26, %v1213_v38  ;;  %v1315_v45 = vrot.slane %v1314_v49, 2  ;;  %v1320_v44 = vmax.f32 %v1192_v63, %v1319_v40 }
 0x17f   : > { %v1222_v55 = vmax.f32 %v1220_v48, %v1221_v58  ;;  %v1227_v34 = vrot.slane %v1226_v54, 1  ;;  %v1303_v36 = vrot.slane %v1302_v47, 2  ;;  %v1308_v2 = vmax.f32 %v1190_v60, %v1307_v20 }
 0x180   : > { %v1210_v50 = vmax.f32 %v1208_v42, %v1209_v1  ;;  %v1215_v12 = vrot.slane %v1214_v6, 1  ;;  %v1316_v32 = vmax.f32 %v1314_v49, %v1315_v45  ;;  %v1321_v8 = vrot.slane %v1320_v44, 2 }
 0x181   : > { %v1406_v31 = vadd.f32 %v2812_v7, %v1222_v55  ;;  %v1228_v30 = vmax.f32 %v1226_v54, %v1227_v34  ;;  %v1304_v15 = vmax.f32 %v1302_v47, %v1303_v36  ;;  %v1309_v11 = vrot.slane %v1308_v2, 2 }
 0x182   : > { %v1216_v53 = vmax.f32 %v1214_v6, %v1215_v12  ;;  %v1317_v17 = vrot.slane %v1316_v32, 1  ;;  %v1322_v5 = vmax.f32 %v1320_v44, %v1321_v8  ;;  %v1404_v59 = vadd.f32 %v2812_v7, %v1210_v50 }
 0x183   : > { %v1407_v37 = vadd.f32 %v2812_v7, %v1228_v30  ;;  %v1305_v19 = vrot.slane %v1304_v15, 1  ;;  %v1310_v9 = vmax.f32 %v1308_v2, %v1309_v11  ;;  %v1438_v33 = vmax.f32 %v1406_v31, 0.0 }
 0x184   : > { %v1405_v27 = vadd.f32 %v2812_v7, %v1216_v53  ;;  %v1318_v22 = vmax.f32 %v1316_v32, %v1317_v17  ;;  %v1323_v24 = vrot.slane %v1322_v5, 1  ;;  %v1436_v62 = vmax.f32 %v1404_v59, 0.0 }
 0x185   : > { %v1306_v57 = vmax.f32 %v1304_v15, %v1305_v19  ;;  %v1311_v28 = vrot.slane %v1310_v9, 1  ;;  %v1439_v23 = vmax.f32 %v1407_v37, 0.0  ;;  %v1503_v43 = vrot.slane %v1438_v33, 6 }
 0x186   : > { %v1437_v52 = vmax.f32 %v1405_v27, 0.0  ;;  %v1422_v10 = vadd.f32 %v2812_v7, %v1318_v22  ;;  %v1324_v61 = vmax.f32 %v1322_v5, %v1323_v24 }
 0x187   : > { %v1312_v39 = vmax.f32 %v1310_v9, %v1311_v28  ;;  %v1420_v0 = vadd.f32 %v2812_v7, %v1306_v57  ;;  %v1506_v29 = vrot.slane %v1439_v23, 5 }
 0x188   : > { %v1500_v4 = vrot.slane %v1437_v52, 7  ;;  %v1423_v14 = vadd.f32 %v2812_v7, %v1324_v61  ;;  %v1454_v25 = vmax.f32 %v1422_v10, 0.0 }
 0x189   : > { %v1421_v18 = vadd.f32 %v2812_v7, %v1312_v39  ;;  %v1452_v46 = vmax.f32 %v1420_v0, 0.0 }
 0x18a   : > { %v1502_v3 = vsel %vm1501_vm7, %v1500_v4, %v1436_v62  ;;  %v1693_v16 = vpop.f32.mrb[4].mxu0  ;;  %v1455_v35 = vmax.f32 %v1423_v14, 0.0  ;;  %v1537_v40 = vrot.slane %v1454_v25, 6 }
 0x18b   : > { %v1505_v13 = vsel %vm1504_vm8, %v1503_v43, %v1502_v3  ;;  %v1453_v26 = vmax.f32 %v1421_v18, 0.0  ;;  %v1179_v56 = vadd.f32 %v1693_v16, %v2799_v21  ;;  %v1061_v63 = vpop.f32.mrb[5].mxu0 }
 0x18c   : > { %v1177_v51 = vadd.f32 %v2799_v21, %v1061_v63  ;;  %v2827_v48 = vsel %vm1507_vm9, %v1506_v29, %v1505_v13  ;;  %v1694_v41 = vpop.f32.mrb[6].mxu0  ;;  %v1539_v47 = vrot.slane %v1455_v35, 5 }
 0x18d   : > { %v1535_v60 = vrot.slane %v1453_v26, 7  ;;  %v1241_v42 = vrot.slane %v1179_v56, 4  ;;  %v1180_v38 = vadd.f32 %v1694_v41, %v2799_v21  ;;  %v1064_v49 = vpop.f32.mrb[7].mxu0 }
 0x18e   : > { %v1229_v58 = vrot.slane %v1177_v51, 4  ;;  %v1178_v54 = vadd.f32 %v2799_v21, %v1064_v49 }
 0x18f   : > { %v1536_v20 = vsel %vm1501_vm7, %v1535_v60, %v1452_v46  ;;  %v1242_v1 = vmax.f32 %v1179_v56, %v1241_v42  ;;  %v1247_v6 = vrot.slane %v1180_v38, 4  ;;  %v1709_v45 = vpop.f32.mrb[4].mxu1 }
 0x190   : > { %v1538_v44 = vsel %vm1504_vm8, %v1537_v40, %v1536_v20  ;;  %v1230_v55 = vmax.f32 %v1177_v51, %v1229_v58  ;;  %v1235_v34 = vrot.slane %v1178_v54, 4  ;;  %v1195_v36 = vadd.f32 %v1709_v45, %v2799_v21  ;;  %v1125_v2 = vpop.f32.mrb[5].mxu1 }
 0x191   : > { %v1243_v50 = vrot.slane %v1242_v1, 2  ;;  %v1248_v12 = vmax.f32 %v1180_v38, %v1247_v6  ;;  %v1193_v32 = vadd.f32 %v2799_v21, %v1125_v2  ;;  %v2836_v8 = vsel %vm1507_vm9, %v1539_v47, %v1538_v44  ;;  %v1710_v31 = vpop.f32.mrb[6].mxu1 }
 0x192   : > { %v1231_v30 = vrot.slane %v1230_v55, 2  ;;  %v1236_v15 = vmax.f32 %v1178_v54, %v1235_v34  ;;  %v1337_v11 = vrot.slane %v1195_v36, 4  ;;  %v1196_v53 = vadd.f32 %v1710_v31, %v2799_v21  ;;  %v1128_v17 = vpop.f32.mrb[7].mxu1 }
 0x193   : > { %v1244_v5 = vmax.f32 %v1242_v1, %v1243_v50  ;;  %v1249_v37 = vrot.slane %v1248_v12, 2  ;;  %v1325_v19 = vrot.slane %v1193_v32, 4  ;;  %v1194_v9 = vadd.f32 %v2799_v21, %v1128_v17 }
 0x194   : > { %v1232_v59 = vmax.f32 %v1230_v55, %v1231_v30  ;;  %v1237_v27 = vrot.slane %v1236_v15, 2  ;;  %v1338_v22 = vmax.f32 %v1195_v36, %v1337_v11  ;;  %v1343_v24 = vrot.slane %v1196_v53, 4 }
 0x195   : > { %v1245_v33 = vrot.slane %v1244_v5, 1  ;;  %v1250_v57 = vmax.f32 %v1248_v12, %v1249_v37  ;;  %v1326_v28 = vmax.f32 %v1193_v32, %v1325_v19  ;;  %v1331_v23 = vrot.slane %v1194_v9, 4 }
 0x196   : > { %v1233_v52 = vrot.slane %v1232_v59, 1  ;;  %v1238_v10 = vmax.f32 %v1236_v15, %v1237_v27  ;;  %v1339_v61 = vrot.slane %v1338_v22, 2  ;;  %v1344_v39 = vmax.f32 %v1196_v53, %v1343_v24 }
 0x197   : > { %v1246_v62 = vmax.f32 %v1244_v5, %v1245_v33  ;;  %v1251_v4 = vrot.slane %v1250_v57, 1  ;;  %v1327_v14 = vrot.slane %v1326_v28, 2  ;;  %v1332_v43 = vmax.f32 %v1194_v9, %v1331_v23 }
 0x198   : > { %v1234_v0 = vmax.f32 %v1232_v59, %v1233_v52  ;;  %v1239_v18 = vrot.slane %v1238_v10, 1  ;;  %v1340_v29 = vmax.f32 %v1338_v22, %v1339_v61  ;;  %v1345_v3 = vrot.slane %v1344_v39, 2 }
 0x199   : > { %v1410_v25 = vadd.f32 %v2812_v7, %v1246_v62  ;;  %v1252_v16 = vmax.f32 %v1250_v57, %v1251_v4  ;;  %v1328_v13 = vmax.f32 %v1326_v28, %v1327_v14  ;;  %v1333_v35 = vrot.slane %v1332_v43, 2 }
 0x19a   : > { %v1408_v26 = vadd.f32 %v2812_v7, %v1234_v0  ;;  %v1240_v56 = vmax.f32 %v1238_v10, %v1239_v18  ;;  %v1341_v63 = vrot.slane %v1340_v29, 1  ;;  %v1346_v51 = vmax.f32 %v1344_v39, %v1345_v3 }
 0x19b   : > { %v1411_v41 = vadd.f32 %v2812_v7, %v1252_v16  ;;  %v1329_v46 = vrot.slane %v1328_v13, 1  ;;  %v1334_v60 = vmax.f32 %v1332_v43, %v1333_v35  ;;  %v1442_v58 = vmax.f32 %v1410_v25, 0.0 }
 0x19c   : > { %v1440_v42 = vmax.f32 %v1408_v26, 0.0  ;;  %v1409_v38 = vadd.f32 %v2812_v7, %v1240_v56  ;;  %v1342_v49 = vmax.f32 %v1340_v29, %v1341_v63  ;;  %v1347_v40 = vrot.slane %v1346_v51, 1 }
 0x19d   : > { %v1443_v54 = vmax.f32 %v1411_v41, 0.0  ;;  %v1330_v47 = vmax.f32 %v1328_v13, %v1329_v46  ;;  %v1335_v20 = vrot.slane %v1334_v60, 1  ;;  %v1515_v12 = vrot.slane %v1442_v58, 2 }
 0x19e   : > { %v1509_v1 = vrot.slane %v1440_v42, 4  ;;  %v1441_v6 = vmax.f32 %v1409_v38, 0.0  ;;  %v1426_v45 = vadd.f32 %v2812_v7, %v1342_v49  ;;  %v1348_v44 = vmax.f32 %v1346_v51, %v1347_v40 }
 0x19f   : > { %v1424_v55 = vadd.f32 %v2812_v7, %v1330_v47  ;;  %v1336_v34 = vmax.f32 %v1334_v60, %v1335_v20  ;;  %v1518_v30 = vrot.slane %v1443_v54, 1 }
 0x1a0   : > { %v1511_v36 = vsel %vm1510_vm10, %v1509_v1, %v2827_v48  ;;  %v1512_v2 = vrot.slane %v1441_v6, 3  ;;  %v1427_v50 = vadd.f32 %v2812_v7, %v1348_v44  ;;  %v1458_v11 = vmax.f32 %v1426_v45, 0.0 }
 0x1a1   : > { %v1456_v32 = vmax.f32 %v1424_v55, 0.0  ;;  %v1425_v31 = vadd.f32 %v2812_v7, %v1336_v34 }
 0x1a2   : > { %v1514_v15 = vsel %vm1513_vm11, %v1512_v2, %v1511_v36  ;;  %v1459_v48 = vmax.f32 %v1427_v50, 0.0  ;;  %v1697_v53 = vpop.f32.mrb[8].mxu0  ;;  %v1545_v52 = vrot.slane %v1458_v11, 2 }
 0x1a3   : > { %v1517_v17 = vsel %vm1516_vm12, %v1515_v12, %v1514_v15  ;;  %v1541_v5 = vrot.slane %v1456_v32, 4  ;;  %v1457_v37 = vmax.f32 %v1425_v31, 0.0  ;;  %v1183_v19 = vadd.f32 %v1697_v53, %v2799_v21  ;;  %v1077_v9 = vpop.f32.mrb[9].mxu0 }
 0x1a4   : > { %v1520_v59 = vsel %vm1519_vm13, %v1518_v30, %v1517_v17  ;;  %v1181_v27 = vadd.f32 %v2799_v21, %v1077_v9  ;;  %v1698_v22 = vpop.f32.mrb[10].mxu0  ;;  %v1547_v39 = vrot.slane %v1459_v48, 1 }
 0x1a5   : > { %1567 = vst [vmem:[%s2864_s16] sm:$0xff] %v1520_v59  ;;  %v1542_v24 = vsel %vm1510_vm10, %v1541_v5, %v2836_v8  ;;  %v1543_v33 = vrot.slane %v1457_v37, 3  ;;  %v1265_v57 = vrot.slane %v1183_v19, 4  ;;  %v1184_v28 = vadd.f32 %v1698_v22, %v2799_v21  ;;  %v1080_v23 = vpop.f32.mrb[11].mxu0 }
 0x1a6   : > { %v1253_v10 = vrot.slane %v1181_v27, 4  ;;  %v1182_v61 = vadd.f32 %v2799_v21, %v1080_v23 }
 0x1a7   : > { %v1544_v62 = vsel %vm1513_vm11, %v1543_v33, %v1542_v24  ;;  %v1266_v4 = vmax.f32 %v1183_v19, %v1265_v57  ;;  %v1271_v14 = vrot.slane %v1184_v28, 4  ;;  %v1713_v43 = vpop.f32.mrb[8].mxu1 }
 0x1a8   : > { %v1546_v0 = vsel %vm1516_vm12, %v1545_v52, %v1544_v62  ;;  %v1254_v18 = vmax.f32 %v1181_v27, %v1253_v10  ;;  %v1259_v29 = vrot.slane %v1182_v61, 4  ;;  %v1199_v8 = vadd.f32 %v1713_v43, %v2799_v21  ;;  %v1141_v3 = vpop.f32.mrb[9].mxu1 }
 0x1a9   : > { %v2880_v25 = vsel %vm1519_vm13, %v1547_v39, %v1546_v0  ;;  %v1267_v16 = vrot.slane %v1266_v4, 2  ;;  %v1272_v13 = vmax.f32 %v1184_v28, %v1271_v14  ;;  %v1197_v35 = vadd.f32 %v2799_v21, %v1141_v3  ;;  %v1714_v26 = vpop.f32.mrb[10].mxu1 }
 0x1aa   : > { %v1255_v56 = vrot.slane %v1254_v18, 2  ;;  %v1260_v63 = vmax.f32 %v1182_v61, %v1259_v29  ;;  %v1361_v51 = vrot.slane %v1199_v8, 4  ;;  %v1200_v41 = vadd.f32 %v1714_v26, %v2799_v21  ;;  %v1144_v46 = vpop.f32.mrb[11].mxu1  ;;  %1569 = vst [vmem:[%s2864_s16 + $0x10] sm:$0xff] %v2880_v25 }
 0x1ab   : > { %v1268_v60 = vmax.f32 %v1266_v4, %v1267_v16  ;;  %v1273_v42 = vrot.slane %v1272_v13, 2  ;;  %v1349_v38 = vrot.slane %v1197_v35, 4  ;;  %v1198_v49 = vadd.f32 %v2799_v21, %v1144_v46 }
 0x1ac   : > { %v1256_v40 = vmax.f32 %v1254_v18, %v1255_v56  ;;  %v1261_v58 = vrot.slane %v1260_v63, 2  ;;  %v1362_v54 = vmax.f32 %v1199_v8, %v1361_v51  ;;  %v1367_v47 = vrot.slane %v1200_v41, 4 }
 0x1ad   : > { %v1269_v20 = vrot.slane %v1268_v60, 1  ;;  %v1274_v1 = vmax.f32 %v1272_v13, %v1273_v42  ;;  %v1350_v6 = vmax.f32 %v1197_v35, %v1349_v38  ;;  %v1355_v45 = vrot.slane %v1198_v49, 4 }
 0x1ae   : > { %v1257_v44 = vrot.slane %v1256_v40, 1  ;;  %v1262_v55 = vmax.f32 %v1260_v63, %v1261_v58  ;;  %v1363_v34 = vrot.slane %v1362_v54, 2  ;;  %v1368_v36 = vmax.f32 %v1200_v41, %v1367_v47 }
 0x1af   : > { %v1270_v2 = vmax.f32 %v1268_v60, %v1269_v20  ;;  %v1275_v50 = vrot.slane %v1274_v1, 1  ;;  %v1351_v12 = vrot.slane %v1350_v6, 2  ;;  %v1356_v32 = vmax.f32 %v1198_v49, %v1355_v45 }
 0x1b0   : > { %v1258_v31 = vmax.f32 %v1256_v40, %v1257_v44  ;;  %v1263_v30 = vrot.slane %v1262_v55, 1  ;;  %v1364_v15 = vmax.f32 %v1362_v54, %v1363_v34  ;;  %v1369_v11 = vrot.slane %v1368_v36, 2 }
 0x1b1   : > { %v1414_v48 = vadd.f32 %v2812_v7, %v1270_v2  ;;  %v1276_v53 = vmax.f32 %v1274_v1, %v1275_v50  ;;  %v1352_v17 = vmax.f32 %v1350_v6, %v1351_v12  ;;  %v1357_v5 = vrot.slane %v1356_v32, 2 }
 0x1b2   : > { %v1264_v37 = vmax.f32 %v1262_v55, %v1263_v30  ;;  %v1365_v19 = vrot.slane %v1364_v15, 1  ;;  %v1370_v9 = vmax.f32 %v1368_v36, %v1369_v11  ;;  %v1412_v24 = vadd.f32 %v2812_v7, %v1258_v31 }
 0x1b3   : > { %v1415_v59 = vadd.f32 %v2812_v7, %v1276_v53  ;;  %v1353_v27 = vrot.slane %v1352_v17, 1  ;;  %v1358_v22 = vmax.f32 %v1356_v32, %v1357_v5  ;;  %v1446_v23 = vmax.f32 %v1414_v48, 0.0 }
 0x1b4   : > { %v1413_v33 = vadd.f32 %v2812_v7, %v1264_v37  ;;  %v1366_v57 = vmax.f32 %v1364_v15, %v1365_v19  ;;  %v1371_v28 = vrot.slane %v1370_v9, 1  ;;  %v1444_v43 = vmax.f32 %v1412_v24, 0.0 }
 0x1b5   : > { %v1354_v52 = vmax.f32 %v1352_v17, %v1353_v27  ;;  %v1359_v10 = vrot.slane %v1358_v22, 1  ;;  %v1447_v61 = vmax.f32 %v1415_v59, 0.0  ;;  %v1523_v29 = vrot.slane %v1446_v23, 6 }
 0x1b6   : > { %v1445_v39 = vmax.f32 %v1413_v33, 0.0  ;;  %v1430_v62 = vadd.f32 %v2812_v7, %v1366_v57  ;;  %v1372_v4 = vmax.f32 %v1370_v9, %v1371_v28 }
 0x1b7   : > { %v1360_v14 = vmax.f32 %v1358_v22, %v1359_v10  ;;  %v1428_v8 = vadd.f32 %v2812_v7, %v1354_v52  ;;  %v1525_v16 = vrot.slane %v1447_v61, 5 }
 0x1b8   : > { %v1521_v0 = vrot.slane %v1445_v39, 7  ;;  %v1431_v18 = vadd.f32 %v2812_v7, %v1372_v4  ;;  %v1462_v35 = vmax.f32 %v1430_v62, 0.0 }
 0x1b9   : > { %v1429_v3 = vadd.f32 %v2812_v7, %v1360_v14  ;;  %v1460_v49 = vmax.f32 %v1428_v8, 0.0 }
 0x1ba   : > { %v1522_v13 = vsel %vm1501_vm7, %v1521_v0, %v1444_v43  ;;  %v1701_v26 = vpop.f32.mrb[12].mxu0  ;;  %v1463_v63 = vmax.f32 %v1431_v18, 0.0  ;;  %v1551_v20 = vrot.slane %v1462_v35, 6 }
 0x1bb   : > { %v1524_v56 = vsel %vm1504_vm8, %v1523_v29, %v1522_v13  ;;  %v1461_v51 = vmax.f32 %v1429_v3, 0.0  ;;  %v1187_v41 = vadd.f32 %v1701_v26, %v2799_v21  ;;  %v1093_v46 = vpop.f32.mrb[13].mxu0 }
 0x1bc   : > { %v1185_v60 = vadd.f32 %v2799_v21, %v1093_v46  ;;  %v2898_v42 = vsel %vm1507_vm9, %v1525_v16, %v1524_v56  ;;  %v1702_v38 = vpop.f32.mrb[14].mxu0  ;;  %v1553_v45 = vrot.slane %v1463_v63, 5 }
 0x1bd   : > { %v1549_v40 = vrot.slane %v1461_v51, 7  ;;  %v1289_v58 = vrot.slane %v1187_v41, 4  ;;  %v1188_v54 = vadd.f32 %v1702_v38, %v2799_v21  ;;  %v1096_v47 = vpop.f32.mrb[15].mxu0 }
 0x1be   : > { %v1277_v1 = vrot.slane %v1185_v60, 4  ;;  %v1186_v6 = vadd.f32 %v2799_v21, %v1096_v47 }
 0x1bf   : > { %v1550_v44 = vsel %vm1501_vm7, %v1549_v40, %v1460_v49  ;;  %v1290_v55 = vmax.f32 %v1187_v41, %v1289_v58  ;;  %v1295_v34 = vrot.slane %v1188_v54, 4  ;;  %v1717_v36 = vpop.f32.mrb[12].mxu1 }
 0x1c0   : > { %v1552_v2 = vsel %vm1504_vm8, %v1551_v20, %v1550_v44  ;;  %v1278_v50 = vmax.f32 %v1185_v60, %v1277_v1  ;;  %v1283_v12 = vrot.slane %v1186_v6, 4  ;;  %v1203_v32 = vadd.f32 %v1717_v36, %v2799_v21  ;;  %v1157_v31 = vpop.f32.mrb[13].mxu1 }
 0x1c1   : > { %v1291_v30 = vrot.slane %v1290_v55, 2  ;;  %v1296_v15 = vmax.f32 %v1188_v54, %v1295_v34  ;;  %v1201_v11 = vadd.f32 %v2799_v21, %v1157_v31  ;;  %v2907_v48 = vsel %vm1507_vm9, %v1553_v45, %v1552_v2  ;;  %v1718_v53 = vpop.f32.mrb[14].mxu1 }
 0x1c2   : > { %v1279_v17 = vrot.slane %v1278_v50, 2  ;;  %v1284_v5 = vmax.f32 %v1186_v6, %v1283_v12  ;;  %v1385_v37 = vrot.slane %v1203_v32, 4  ;;  %v1204_v19 = vadd.f32 %v1718_v53, %v2799_v21  ;;  %v1160_v9 = vpop.f32.mrb[15].mxu1 }
 0x1c3   : > { %v1292_v59 = vmax.f32 %v1290_v55, %v1291_v30  ;;  %v1297_v27 = vrot.slane %v1296_v15, 2  ;;  %v1373_v22 = vrot.slane %v1201_v11, 4  ;;  %v1202_v24 = vadd.f32 %v2799_v21, %v1160_v9 }
 0x1c4   : > { %v1280_v33 = vmax.f32 %v1278_v50, %v1279_v17  ;;  %v1285_v57 = vrot.slane %v1284_v5, 2  ;;  %v1386_v28 = vmax.f32 %v1203_v32, %v1385_v37  ;;  %v1391_v23 = vrot.slane %v1204_v19, 4 }
 0x1c5   : > { %v1293_v52 = vrot.slane %v1292_v59, 1  ;;  %v1298_v10 = vmax.f32 %v1296_v15, %v1297_v27  ;;  %v1374_v61 = vmax.f32 %v1201_v11, %v1373_v22  ;;  %v1379_v39 = vrot.slane %v1202_v24, 4 }
 0x1c6   : > { %v1281_v62 = vrot.slane %v1280_v33, 1  ;;  %v1286_v4 = vmax.f32 %v1284_v5, %v1285_v57  ;;  %v1387_v14 = vrot.slane %v1386_v28, 2  ;;  %v1392_v43 = vmax.f32 %v1204_v19, %v1391_v23 }
 0x1c7   : > { %v1294_v0 = vmax.f32 %v1292_v59, %v1293_v52  ;;  %v1299_v18 = vrot.slane %v1298_v10, 1  ;;  %v1375_v29 = vrot.slane %v1374_v61, 2  ;;  %v1380_v8 = vmax.f32 %v1202_v24, %v1379_v39 }
 0x1c8   : > { %v1282_v3 = vmax.f32 %v1280_v33, %v1281_v62  ;;  %v1287_v16 = vrot.slane %v1286_v4, 1  ;;  %v1388_v13 = vmax.f32 %v1386_v28, %v1387_v14  ;;  %v1393_v21 = vrot.slane %v1392_v43, 2 }
 0x1c9   : > { %v1418_v35 = vadd.f32 %v2812_v7, %v1294_v0  ;;  %v1300_v26 = vmax.f32 %v1298_v10, %v1299_v18  ;;  %v1376_v56 = vmax.f32 %v1374_v61, %v1375_v29  ;;  %v1381_v63 = vrot.slane %v1380_v8, 2 }
 0x1ca   : > { %v1416_v51 = vadd.f32 %v2812_v7, %v1282_v3  ;;  %v1288_v41 = vmax.f32 %v1286_v4, %v1287_v16  ;;  %v1389_v46 = vrot.slane %v1388_v13, 1  ;;  %v1394_v60 = vmax.f32 %v1392_v43, %v1393_v21 }
 0x1cb   : > { %v1419_v38 = vadd.f32 %v2812_v7, %v1300_v26  ;;  %v1377_v49 = vrot.slane %v1376_v56, 1  ;;  %v1382_v40 = vmax.f32 %v1380_v8, %v1381_v63  ;;  %v1450_v1 = vmax.f32 %v1418_v35, 0.0 }
 0x1cc   : > { %v1448_v58 = vmax.f32 %v1416_v51, 0.0  ;;  %v1417_v54 = vadd.f32 %v2812_v7, %v1288_v41  ;;  %v1390_v47 = vmax.f32 %v1388_v13, %v1389_v46  ;;  %v1395_v20 = vrot.slane %v1394_v60, 1 }
 0x1cd   : > { %v1451_v6 = vmax.f32 %v1419_v38, 0.0  ;;  %v1378_v45 = vmax.f32 %v1376_v56, %v1377_v49  ;;  %v1383_v44 = vrot.slane %v1382_v40, 1  ;;  %v1531_v15 = vrot.slane %v1450_v1, 2 }
 0x1ce   : > { %v1527_v55 = vrot.slane %v1448_v58, 4  ;;  %v1449_v34 = vmax.f32 %v1417_v54, 0.0  ;;  %v1434_v36 = vadd.f32 %v2812_v7, %v1390_v47  ;;  %v1396_v2 = vmax.f32 %v1394_v60, %v1395_v20 }
 0x1cf   : > { %v1432_v50 = vadd.f32 %v2812_v7, %v1378_v45  ;;  %v1384_v12 = vmax.f32 %v1382_v40, %v1383_v44  ;;  %v1533_v17 = vrot.slane %v1451_v6, 1 }
 0x1d0   : > { %v1528_v32 = vsel %vm1510_vm10, %v1527_v55, %v2898_v42  ;;  %v1529_v31 = vrot.slane %v1449_v34, 3  ;;  %v1435_v30 = vadd.f32 %v2812_v7, %v1396_v2  ;;  %v1466_v37 = vmax.f32 %v1434_v36, 0.0 }
 0x1d1   : > { %v1464_v11 = vmax.f32 %v1432_v50, 0.0  ;;  %v1433_v53 = vadd.f32 %v2812_v7, %v1384_v12 }
 0x1d2   : > { %v1530_v5 = vsel %vm1513_vm11, %v1529_v31, %v1528_v32  ;;  %v1467_v59 = vmax.f32 %v1435_v30, 0.0  ;;  %v1559_v7 = vrot.slane %v1466_v37, 2 }
 0x1d3   : > { %v1532_v19 = vsel %vm1516_vm12, %v1531_v15, %v1530_v5  ;;  %v1555_v9 = vrot.slane %v1464_v11, 4  ;;  %v1465_v27 = vmax.f32 %v1433_v53, 0.0 }
 0x1d4   : > { %v1534_v42 = vsel %vm1519_vm13, %v1533_v17, %v1532_v19  ;;  %v1561_v33 = vrot.slane %v1467_v59, 1 }
 0x1d5   : > { %1568 = vst [vmem:[%s2864_s16 + $0x8] sm:$0xff] %v1534_v42  ;;  %v1556_v22 = vsel %vm1510_vm10, %v1555_v9, %v2907_v48  ;;  %v1557_v24 = vrot.slane %v1465_v27, 3 }
 0x1d7   : > { %v1558_v57 = vsel %vm1513_vm11, %v1557_v24, %v1556_v22 }
 0x1d8   : > { %v1560_v28 = vsel %vm1516_vm12, %v1559_v7, %v1558_v57 }
 0x1d9   : > { %v1562_v23 = vsel %vm1519_vm13, %v1561_v33, %v1560_v28 }
 0x1da   : > { %1570 = vst [vmem:[%s2864_s16 + $0x18] sm:$0xff] %v1562_v23 }
 0x1db PF: > { %s14_s15 = sadd.s32 1, %s1988_s15  }
 0x1dc   : > { %p11_p5 = scmp.ge.s32.totalorder %s14_s15, 4  }
 0x1de   :  { %13 = sbr.rel (!%p11_p5) target bundleno = 1 (0x1), region = 66 }

</bundles_post_ra>
